<compile_context>
chip_gen: v6e
topology: v6e:2x2x1
jax: 0.10.0
libtpu: 0.0.40
codegen_flags: <defaults>
</compile_context>

<pallas_src>
import functools

import jax
import jax.numpy as jnp
from jax import lax
from jax.experimental import pallas as pl
from jax.experimental.pallas import tpu as pltpu

LANE = 128           # lane padding of each head (requires H, O <= 128)
NEG = -1e30          # filler for unused logit lanes (acts like -inf in LSE)


def _round_up(x, m):
    return ((x + m - 1) // m) * m


def _rnn_seq_kernel(x_ref, h0_ref, wih_ref, wio_ref, whh_ref, who_ref,
                    bh_ref, bo_ref, out_ref, hN_ref, preh_ref):
    """Per batch tile Bt:
      x_ref   : (T, Bt, I)     inputs
      h0_ref  : (Bt, LANE)     initial hidden, lane-padded (lanes >= H are 0)
      wih_ref : (I, LANE)      x -> hidden head        (cols >= H are 0)
      wio_ref : (I, LANE)      x -> logit head         (cols >= O are 0)
      whh_ref : (LANE, LANE)   h -> hidden head        (cols >= H are 0)
      who_ref : (LANE, LANE)   h -> logit head         (cols >= O are 0)
      bh_ref  : (1, LANE)      hidden bias             (lanes >= H are 0)
      bo_ref  : (1, LANE)      logit bias              (lanes >= O are NEG)
      out_ref : (T, Bt, LANE)  log-softmax slab (also used as h_t history stash)
      hN_ref  : (Bt, LANE)     final hidden
      preh_ref: (T, Bt, LANE)  VMEM scratch for the hoisted x-projection
    """
    T, Bt, I = x_ref.shape

    # (1) Hoisted input projection of the hidden head: one GEMM with M = T*Bt
    #     instead of T small M=Bt matmuls on the serial chain. Bias folded in.
    x2d = x_ref[...].reshape(T * Bt, I)
    preh = (jnp.dot(x2d, wih_ref[...], preferred_element_type=jnp.float32)
            + bh_ref[...])
    preh_ref[...] = preh.reshape(T, Bt, LANE)

    # (2) Serial recurrence: one (Bt,128)x(128,128) matmul + one add per step.
    #     h is carried in vregs; the *input* hidden h_t of step t is stashed in
    #     out_ref[t] for the batched post-pass (overwritten below).
    whh = whh_ref[...]                      # resident for the whole sequence

    def step(t, h):
        out_ref[t] = h
        return preh_ref[t] + jnp.dot(h, whh, preferred_element_type=jnp.float32)

    if T <= 16:
        unroll = True
    elif T % 8 == 0:
        unroll = 8
    elif T % 4 == 0:
        unroll = 4
    else:
        unroll = 1
    h_final = lax.fori_loop(0, T, step, h0_ref[...], unroll=unroll)
    hN_ref[...] = h_final

    # (3) Post-pass (off the serial chain): logit head + log-softmax for all
    #     T*Bt rows at once, at full MXU / VPU / EUP efficiency.
    h_all = out_ref[...].reshape(T * Bt, LANE)
    x2d = x_ref[...].reshape(T * Bt, I)     # reload from VMEM; cheap
    logits = (jnp.dot(x2d, wio_ref[...], preferred_element_type=jnp.float32)
              + jnp.dot(h_all, who_ref[...], preferred_element_type=jnp.float32)
              + bo_ref[...])                # lanes >= O stay ~ NEG
    m = jnp.max(logits, axis=-1, keepdims=True)
    z = logits - m
    lse = jnp.log(jnp.sum(jnp.exp(z), axis=-1, keepdims=True))
    out_ref[...] = (z - lse).reshape(T, Bt, LANE)


def prepare_rnn_params(w_h, b_h, w_o, b_o, input_size):
    """One-time (parameter-load-time) split + transpose + lane-pad.

    Returns (wi_h, wi_o, wh_h, wh_o, bh, bo) as described in the kernel doc.
    """
    H, C = w_h.shape
    O = w_o.shape[0]
    I = input_size
    assert C == I + H and H <= LANE and O <= LANE
    f32 = jnp.float32
    wi_h = jnp.zeros((I, LANE), f32).at[:, :H].set(w_h[:, :I].T.astype(f32))
    wi_o = jnp.zeros((I, LANE), f32).at[:, :O].set(w_o[:, :I].T.astype(f32))
    wh_h = jnp.zeros((LANE, LANE), f32).at[:H, :H].set(w_h[:, I:].T.astype(f32))
    wh_o = jnp.zeros((LANE, LANE), f32).at[:H, :O].set(w_o[:, I:].T.astype(f32))
    bh = jnp.zeros((1, LANE), f32).at[:, :H].set(b_h.astype(f32).reshape(1, H))
    bo = jnp.full((1, LANE), NEG, f32).at[:, :O].set(b_o.astype(f32).reshape(1, O))
    return wi_h, wi_o, wh_h, wh_o, bh, bo


@functools.partial(jax.jit, static_argnames=("hidden_size", "output_size", "b_tile"))
def manual_rnn_forward_seq(x_seq, h0, params, *, hidden_size, output_size,
                           b_tile=None):
    """Run the ManualRNN recurrence over a whole sequence in one kernel call.

    x_seq: (T, B, I) inputs; h0: (B, H) initial hidden; params from
    prepare_rnn_params. Returns (log_softmax outputs (T, B, O), final hidden
    (B, H)). The original module's single-step forward is the T=1 case.
    """
    wi_h, wi_o, wh_h, wh_o, bh, bo = params
    T, B, I = x_seq.shape
    H, O = hidden_size, output_size

    if b_tile is None:
        # One big batch tile (<=128 rows): fills the MXU M dim, no extra grid
        # steps for small batches.
        # TODO(synk): on v7x pass b_tile ~= round_up(ceil(B/2), 8) so the
        # "parallel" batch axis spans both TensorCores.
        b_tile = min(_round_up(max(B, 1), 8), 128)
    assert b_tile % 8 == 0
    Bp = _round_up(B, b_tile)

    x_seq = x_seq.astype(jnp.float32)
    if Bp != B:
        x_seq = jnp.pad(x_seq, ((0, 0), (0, Bp - B), (0, 0)))
        h0 = jnp.pad(h0, ((0, Bp - B), (0, 0)))
    h0_pad = jnp.zeros((Bp, LANE), jnp.float32).at[:, :H].set(h0.astype(jnp.float32))

    # VMEM budget: double-buffered blocks + resident weights + preh scratch.
    vmem_est = 4 * (2 * T * b_tile * I            # x block
                    + 4 * b_tile * LANE           # h0 + hN blocks
                    + 2 * T * b_tile * LANE       # out slab
                    + 2 * (2 * I * LANE + 2 * LANE * LANE + 2 * LANE)  # weights
                    + T * b_tile * LANE)          # preh scratch
    vmem_limit = int(max(32 << 20, min(int(1.25 * vmem_est) + (1 << 20), 96 << 20)))
    # TODO(synk): for very long sequences add an "arbitrary" T-chunk grid axis
    # (accumulator-style hN out_spec) instead of raising vmem_limit further;
    # optionally emit the out slab in bf16 / packed lanes to cut HBM writeback.

    out_pad, hN_pad = pl.pallas_call(
        _rnn_seq_kernel,
        out_shape=(
            jax.ShapeDtypeStruct((T, Bp, LANE), jnp.float32),
            jax.ShapeDtypeStruct((Bp, LANE), jnp.float32),
        ),
        grid_spec=pltpu.PrefetchScalarGridSpec(
            num_scalar_prefetch=0,
            grid=(Bp // b_tile,),                                     # batch tiles
            in_specs=[
                pl.BlockSpec((T, b_tile, I), lambda b: (0, b, 0)),    # x sequence
                pl.BlockSpec((b_tile, LANE), lambda b: (b, 0)),       # h0 (padded)
                pl.BlockSpec((I, LANE), lambda b: (0, 0)),            # wi_h
                pl.BlockSpec((I, LANE), lambda b: (0, 0)),            # wi_o
                pl.BlockSpec((LANE, LANE), lambda b: (0, 0)),         # wh_h
                pl.BlockSpec((LANE, LANE), lambda b: (0, 0)),         # wh_o
                pl.BlockSpec((1, LANE), lambda b: (0, 0)),            # b_h row
                pl.BlockSpec((1, LANE), lambda b: (0, 0)),            # b_o row (NEG fill)
            ],
            out_specs=(
                pl.BlockSpec((T, b_tile, LANE), lambda b: (0, b, 0)), # log-softmax slab
                pl.BlockSpec((b_tile, LANE), lambda b: (b, 0)),       # final hidden
            ),
            scratch_shapes=[pltpu.VMEM((T, b_tile, LANE), jnp.float32)],
        ),
        compiler_params=pltpu.CompilerParams(
            dimension_semantics=("parallel",),    # batch tiles -> v7x's 2 TCs
            vmem_limit_bytes=vmem_limit,
        ),
    )(x_seq, h0_pad, wi_h, wi_o, wh_h, wh_o, bh, bo)

    return out_pad[:, :B, :O], hN_pad[:B, :H]


if __name__ == "__main__":
    # Shapes consistent with the module: input_size=16, hidden_size=32,
    # output_size=8; T=8 steps over a batch of 16 rows.
    input_size, hidden_size, output_size = 16, 32, 8
    seq_len, batch = 8, 16
    C = input_size + hidden_size

    key = jax.random.PRNGKey(0)
    k1, k2, k3, k4, k5, k6, k7 = jax.random.split(key, 7)

    # Deterministic PyTorch nn.Linear-style init.
    bound = 1.0 / jnp.sqrt(jnp.float32(C))
    w_h = jax.random.uniform(k1, (hidden_size, C), jnp.float32, -bound, bound)
    b_h = jax.random.uniform(k2, (hidden_size,), jnp.float32, -bound, bound)
    w_o = jax.random.uniform(k3, (output_size, C), jnp.float32, -bound, bound)
    b_o = jax.random.uniform(k4, (output_size,), jnp.float32, -bound, bound)

    # One-time parameter prep (split + transpose + lane-pad) — not per forward.
    params = prepare_rnn_params(w_h, b_h, w_o, b_o, input_size)

    # Pure-JAX reference: the original module forward applied step by step.
    def ref_step(x, h):
        comb = jnp.concatenate([x, h], axis=-1)
        h_new = comb @ w_h.T + b_h
        logits = comb @ w_o.T + b_o
        return jax.nn.log_softmax(logits, axis=-1), h_new

    def ref_seq(x_seq, h0):
        h = h0
        outs = []
        for t in range(x_seq.shape[0]):
            o_t, h = ref_step(x_seq[t], h)
            outs.append(o_t)
        return jnp.stack(outs), h

    # --- Main check: T=8, B=16 (single batch tile, fully unrolled loop).
    x_seq = jax.random.normal(k5, (seq_len, batch, input_size), jnp.float32)
    h0 = jnp.zeros((batch, hidden_size), jnp.float32)     # module's init_hidden()
    out_log, h_final = manual_rnn_forward_seq(
        x_seq, h0, params, hidden_size=hidden_size, output_size=output_size)
    jax.block_until_ready((out_log, h_final))
    out_ref, h_ref = ref_seq(x_seq, h0)
    assert jnp.allclose(out_log, out_ref, atol=1e-4, rtol=1e-4), \
        float(jnp.max(jnp.abs(out_log - out_ref)))
    assert jnp.allclose(h_final, h_ref, atol=1e-4, rtol=1e-4), \
        float(jnp.max(jnp.abs(h_final - h_ref)))

    # --- Secondary check: T=20, B=5 (batch padding + rolled/partially-unrolled loop).
    x2 = jax.random.normal(k6, (20, 5, input_size), jnp.float32)
    h02 = jnp.zeros((5, hidden_size), jnp.float32)
    out2, hN2 = manual_rnn_forward_seq(
        x2, h02, params, hidden_size=hidden_size, output_size=output_size)
    jax.block_until_ready((out2, hN2))
    out2_ref, h2_ref = ref_seq(x2, h02)
    assert jnp.allclose(out2, out2_ref, atol=1e-4, rtol=1e-4)
    assert jnp.allclose(hN2, h2_ref, atol=1e-4, rtol=1e-4)

    # --- Single-step, single-vector check == the original module forward exactly.
    x1 = jax.random.normal(k7, (input_size,), jnp.float32)
    o1, h1 = manual_rnn_forward_seq(
        x1.reshape(1, 1, input_size), jnp.zeros((1, hidden_size), jnp.float32),
        params, hidden_size=hidden_size, output_size=output_size)
    comb1 = jnp.concatenate([x1, jnp.zeros((hidden_size,), jnp.float32)])
    ref_o1 = jax.nn.log_softmax(w_o @ comb1 + b_o, axis=0)
    ref_h1 = w_h @ comb1 + b_h
    assert jnp.allclose(o1[0, 0], ref_o1, atol=1e-4, rtol=1e-4)
    assert jnp.allclose(h1[0], ref_h1, atol=1e-4, rtol=1e-4)

    print("KERNEL_OK")
</pallas_src>

<mosaic_0001>
module attributes {stable_mosaic.version = 11 : i64} {
  func.func @_rnn_seq_kernel(%arg0: i32, %arg1: memref<8x16x16xf32, #tpu.memory_space<vmem>>, %arg2: memref<16x128xf32, #tpu.memory_space<vmem>>, %arg3: memref<16x128xf32, #tpu.memory_space<vmem>>, %arg4: memref<16x128xf32, #tpu.memory_space<vmem>>, %arg5: memref<128x128xf32, #tpu.memory_space<vmem>>, %arg6: memref<128x128xf32, #tpu.memory_space<vmem>>, %arg7: memref<1x128xf32, #tpu.memory_space<vmem>>, %arg8: memref<1x128xf32, #tpu.memory_space<vmem>>, %arg9: memref<8x16x128xf32, #tpu.memory_space<vmem>>, %arg10: memref<16x128xf32, #tpu.memory_space<vmem>>, %arg11: memref<8x16x128xf32, #tpu.memory_space<vmem>>) attributes {dimension_semantics = [#tpu.dimension_semantics<parallel>], iteration_bounds = array<i64: 1>, scalar_prefetch = 0 : i64, scratch_operands = 1 : i64, tpu.core_type = #tpu.core_type<tc>, window_params = [{transform_indices = @transform_0, window_bounds = array<i64: 8, 16, 16>}, {transform_indices = @transform_1, window_bounds = array<i64: 16, 128>}, {pipeline_mode = #tpu.pipeline_mode<synchronous>, transform_indices = @transform_2, window_bounds = array<i64: 16, 128>}, {pipeline_mode = #tpu.pipeline_mode<synchronous>, transform_indices = @transform_3, window_bounds = array<i64: 16, 128>}, {pipeline_mode = #tpu.pipeline_mode<synchronous>, transform_indices = @transform_4, window_bounds = array<i64: 128, 128>}, {pipeline_mode = #tpu.pipeline_mode<synchronous>, transform_indices = @transform_5, window_bounds = array<i64: 128, 128>}, {pipeline_mode = #tpu.pipeline_mode<synchronous>, transform_indices = @transform_6, window_bounds = array<i64: 1, 128>}, {pipeline_mode = #tpu.pipeline_mode<synchronous>, transform_indices = @transform_7, window_bounds = array<i64: 1, 128>}, {transform_indices = @transform_8, window_bounds = array<i64: 8, 16, 128>}, {transform_indices = @transform_9, window_bounds = array<i64: 16, 128>}]} {
    %c0 = arith.constant 0 : index
    %c0_0 = arith.constant 0 : index
    %c0_1 = arith.constant 0 : index
    %0 = vector.load %arg1[%c0, %c0_0, %c0_1] : memref<8x16x16xf32, #tpu.memory_space<vmem>>, vector<8x16x16xf32>
    %1 = vector.shape_cast %0 : vector<8x16x16xf32> to vector<128x16xf32>
    %c0_2 = arith.constant 0 : index
    %c0_3 = arith.constant 0 : index
    %2 = vector.load %arg3[%c0_2, %c0_3] : memref<16x128xf32, #tpu.memory_space<vmem>>, vector<16x128xf32>
    %cst = arith.constant dense<0.000000e+00> : vector<128x128xf32>
    %3 = tpu.matmul %1, %2, %cst {dimension_numbers = #tpu.dot_dimension_numbers<[1], [0], [0], [1], [0, 0, 1, 1], [], []>} : vector<128x16xf32>, vector<16x128xf32>, vector<128x128xf32> -> vector<128x128xf32>
    %c0_4 = arith.constant 0 : index
    %c0_5 = arith.constant 0 : index
    %4 = vector.load %arg7[%c0_4, %c0_5] : memref<1x128xf32, #tpu.memory_space<vmem>>, vector<1x128xf32>
    %5 = vector.broadcast %4 : vector<1x128xf32> to vector<128x128xf32>
    %6 = arith.addf %3, %5 : vector<128x128xf32>
    %7 = vector.shape_cast %6 : vector<128x128xf32> to vector<8x16x128xf32>
    %c0_6 = arith.constant 0 : index
    %c0_7 = arith.constant 0 : index
    %c0_8 = arith.constant 0 : index
    %8 = vector.load %arg11[%c0_6, %c0_7, %c0_8] : memref<8x16x128xf32, #tpu.memory_space<vmem>>, vector<8x16x128xf32>
    tpu.vector_store %arg11[%c0_6, %c0_7, %c0_8], %7 {strides = array<i32>} : memref<8x16x128xf32, #tpu.memory_space<vmem>>, vector<8x16x128xf32>,
    %c0_9 = arith.constant 0 : index
    %c0_10 = arith.constant 0 : index
    %9 = vector.load %arg5[%c0_9, %c0_10] : memref<128x128xf32, #tpu.memory_space<vmem>>, vector<128x128xf32>
    %c0_11 = arith.constant 0 : index
    %c0_12 = arith.constant 0 : index
    %10 = vector.load %arg2[%c0_11, %c0_12] : memref<16x128xf32, #tpu.memory_space<vmem>>, vector<16x128xf32>
    %c0_i32 = arith.constant 0 : i32
    %11 = arith.index_cast %c0_i32 : i32 to index
    %c0_13 = arith.constant 0 : index
    %c0_14 = arith.constant 0 : index
    %12 = vector.load %arg9[%11, %c0_13, %c0_14] : memref<8x16x128xf32, #tpu.memory_space<vmem>>, vector<1x16x128xf32>
    %13 = vector.shape_cast %12 : vector<1x16x128xf32> to vector<16x128xf32>
    %14 = vector.shape_cast %10 : vector<16x128xf32> to vector<1x16x128xf32>
    tpu.vector_store %arg9[%11, %c0_13, %c0_14], %14 {strides = array<i32>} : memref<8x16x128xf32, #tpu.memory_space<vmem>>, vector<1x16x128xf32>,
    %15 = arith.index_cast %c0_i32 : i32 to index
    %c0_15 = arith.constant 0 : index
    %c0_16 = arith.constant 0 : index
    %16 = vector.load %arg11[%15, %c0_15, %c0_16] : memref<8x16x128xf32, #tpu.memory_space<vmem>>, vector<1x16x128xf32>
    %17 = vector.shape_cast %16 : vector<1x16x128xf32> to vector<16x128xf32>
    %cst_17 = arith.constant dense<0.000000e+00> : vector<16x128xf32>
    %18 = tpu.matmul %10, %9, %cst_17 {dimension_numbers = #tpu.dot_dimension_numbers<[1], [0], [0], [1], [0, 0, 1, 1], [], []>} : vector<16x128xf32>, vector<128x128xf32>, vector<16x128xf32> -> vector<16x128xf32>
    %19 = arith.addf %17, %18 : vector<16x128xf32>
    %c1_i32 = arith.constant 1 : i32
    %20 = arith.index_cast %c1_i32 : i32 to index
    %c0_18 = arith.constant 0 : index
    %c0_19 = arith.constant 0 : index
    %21 = vector.load %arg9[%20, %c0_18, %c0_19] : memref<8x16x128xf32, #tpu.memory_space<vmem>>, vector<1x16x128xf32>
    %22 = vector.shape_cast %21 : vector<1x16x128xf32> to vector<16x128xf32>
    %23 = vector.shape_cast %19 : vector<16x128xf32> to vector<1x16x128xf32>
    tpu.vector_store %arg9[%20, %c0_18, %c0_19], %23 {strides = array<i32>} : memref<8x16x128xf32, #tpu.memory_space<vmem>>, vector<1x16x128xf32>,
    %24 = arith.index_cast %c1_i32 : i32 to index
    %c0_20 = arith.constant 0 : index
    %c0_21 = arith.constant 0 : index
    %25 = vector.load %arg11[%24, %c0_20, %c0_21] : memref<8x16x128xf32, #tpu.memory_space<vmem>>, vector<1x16x128xf32>
    %26 = vector.shape_cast %25 : vector<1x16x128xf32> to vector<16x128xf32>
    %cst_22 = arith.constant dense<0.000000e+00> : vector<16x128xf32>
    %27 = tpu.matmul %19, %9, %cst_22 {dimension_numbers = #tpu.dot_dimension_numbers<[1], [0], [0], [1], [0, 0, 1, 1], [], []>} : vector<16x128xf32>, vector<128x128xf32>, vector<16x128xf32> -> vector<16x128xf32>
    %28 = arith.addf %26, %27 : vector<16x128xf32>
    %c2_i32 = arith.constant 2 : i32
    %29 = arith.index_cast %c2_i32 : i32 to index
    %c0_23 = arith.constant 0 : index
    %c0_24 = arith.constant 0 : index
    %30 = vector.load %arg9[%29, %c0_23, %c0_24] : memref<8x16x128xf32, #tpu.memory_space<vmem>>, vector<1x16x128xf32>
    %31 = vector.shape_cast %30 : vector<1x16x128xf32> to vector<16x128xf32>
    %32 = vector.shape_cast %28 : vector<16x128xf32> to vector<1x16x128xf32>
    tpu.vector_store %arg9[%29, %c0_23, %c0_24], %32 {strides = array<i32>} : memref<8x16x128xf32, #tpu.memory_space<vmem>>, vector<1x16x128xf32>,
    %33 = arith.index_cast %c2_i32 : i32 to index
    %c0_25 = arith.constant 0 : index
    %c0_26 = arith.constant 0 : index
    %34 = vector.load %arg11[%33, %c0_25, %c0_26] : memref<8x16x128xf32, #tpu.memory_space<vmem>>, vector<1x16x128xf32>
    %35 = vector.shape_cast %34 : vector<1x16x128xf32> to vector<16x128xf32>
    %cst_27 = arith.constant dense<0.000000e+00> : vector<16x128xf32>
    %36 = tpu.matmul %28, %9, %cst_27 {dimension_numbers = #tpu.dot_dimension_numbers<[1], [0], [0], [1], [0, 0, 1, 1], [], []>} : vector<16x128xf32>, vector<128x128xf32>, vector<16x128xf32> -> vector<16x128xf32>
    %37 = arith.addf %35, %36 : vector<16x128xf32>
    %c3_i32 = arith.constant 3 : i32
    %38 = arith.index_cast %c3_i32 : i32 to index
    %c0_28 = arith.constant 0 : index
    %c0_29 = arith.constant 0 : index
    %39 = vector.load %arg9[%38, %c0_28, %c0_29] : memref<8x16x128xf32, #tpu.memory_space<vmem>>, vector<1x16x128xf32>
    %40 = vector.shape_cast %39 : vector<1x16x128xf32> to vector<16x128xf32>
    %41 = vector.shape_cast %37 : vector<16x128xf32> to vector<1x16x128xf32>
    tpu.vector_store %arg9[%38, %c0_28, %c0_29], %41 {strides = array<i32>} : memref<8x16x128xf32, #tpu.memory_space<vmem>>, vector<1x16x128xf32>,
    %42 = arith.index_cast %c3_i32 : i32 to index
    %c0_30 = arith.constant 0 : index
    %c0_31 = arith.constant 0 : index
    %43 = vector.load %arg11[%42, %c0_30, %c0_31] : memref<8x16x128xf32, #tpu.memory_space<vmem>>, vector<1x16x128xf32>
    %44 = vector.shape_cast %43 : vector<1x16x128xf32> to vector<16x128xf32>
    %cst_32 = arith.constant dense<0.000000e+00> : vector<16x128xf32>
    %45 = tpu.matmul %37, %9, %cst_32 {dimension_numbers = #tpu.dot_dimension_numbers<[1], [0], [0], [1], [0, 0, 1, 1], [], []>} : vector<16x128xf32>, vector<128x128xf32>, vector<16x128xf32> -> vector<16x128xf32>
    %46 = arith.addf %44, %45 : vector<16x128xf32>
    %c4_i32 = arith.constant 4 : i32
    %47 = arith.index_cast %c4_i32 : i32 to index
    %c0_33 = arith.constant 0 : index
    %c0_34 = arith.constant 0 : index
    %48 = vector.load %arg9[%47, %c0_33, %c0_34] : memref<8x16x128xf32, #tpu.memory_space<vmem>>, vector<1x16x128xf32>
    %49 = vector.shape_cast %48 : vector<1x16x128xf32> to vector<16x128xf32>
    %50 = vector.shape_cast %46 : vector<16x128xf32> to vector<1x16x128xf32>
    tpu.vector_store %arg9[%47, %c0_33, %c0_34], %50 {strides = array<i32>} : memref<8x16x128xf32, #tpu.memory_space<vmem>>, vector<1x16x128xf32>,
    %51 = arith.index_cast %c4_i32 : i32 to index
    %c0_35 = arith.constant 0 : index
    %c0_36 = arith.constant 0 : index
    %52 = vector.load %arg11[%51, %c0_35, %c0_36] : memref<8x16x128xf32, #tpu.memory_space<vmem>>, vector<1x16x128xf32>
    %53 = vector.shape_cast %52 : vector<1x16x128xf32> to vector<16x128xf32>
    %cst_37 = arith.constant dense<0.000000e+00> : vector<16x128xf32>
    %54 = tpu.matmul %46, %9, %cst_37 {dimension_numbers = #tpu.dot_dimension_numbers<[1], [0], [0], [1], [0, 0, 1, 1], [], []>} : vector<16x128xf32>, vector<128x128xf32>, vector<16x128xf32> -> vector<16x128xf32>
    %55 = arith.addf %53, %54 : vector<16x128xf32>
    %c5_i32 = arith.constant 5 : i32
    %56 = arith.index_cast %c5_i32 : i32 to index
    %c0_38 = arith.constant 0 : index
    %c0_39 = arith.constant 0 : index
    %57 = vector.load %arg9[%56, %c0_38, %c0_39] : memref<8x16x128xf32, #tpu.memory_space<vmem>>, vector<1x16x128xf32>
    %58 = vector.shape_cast %57 : vector<1x16x128xf32> to vector<16x128xf32>
    %59 = vector.shape_cast %55 : vector<16x128xf32> to vector<1x16x128xf32>
    tpu.vector_store %arg9[%56, %c0_38, %c0_39], %59 {strides = array<i32>} : memref<8x16x128xf32, #tpu.memory_space<vmem>>, vector<1x16x128xf32>,
    %60 = arith.index_cast %c5_i32 : i32 to index
    %c0_40 = arith.constant 0 : index
    %c0_41 = arith.constant 0 : index
    %61 = vector.load %arg11[%60, %c0_40, %c0_41] : memref<8x16x128xf32, #tpu.memory_space<vmem>>, vector<1x16x128xf32>
    %62 = vector.shape_cast %61 : vector<1x16x128xf32> to vector<16x128xf32>
    %cst_42 = arith.constant dense<0.000000e+00> : vector<16x128xf32>
    %63 = tpu.matmul %55, %9, %cst_42 {dimension_numbers = #tpu.dot_dimension_numbers<[1], [0], [0], [1], [0, 0, 1, 1], [], []>} : vector<16x128xf32>, vector<128x128xf32>, vector<16x128xf32> -> vector<16x128xf32>
    %64 = arith.addf %62, %63 : vector<16x128xf32>
    %c6_i32 = arith.constant 6 : i32
    %65 = arith.index_cast %c6_i32 : i32 to index
    %c0_43 = arith.constant 0 : index
    %c0_44 = arith.constant 0 : index
    %66 = vector.load %arg9[%65, %c0_43, %c0_44] : memref<8x16x128xf32, #tpu.memory_space<vmem>>, vector<1x16x128xf32>
    %67 = vector.shape_cast %66 : vector<1x16x128xf32> to vector<16x128xf32>
    %68 = vector.shape_cast %64 : vector<16x128xf32> to vector<1x16x128xf32>
    tpu.vector_store %arg9[%65, %c0_43, %c0_44], %68 {strides = array<i32>} : memref<8x16x128xf32, #tpu.memory_space<vmem>>, vector<1x16x128xf32>,
    %69 = arith.index_cast %c6_i32 : i32 to index
    %c0_45 = arith.constant 0 : index
    %c0_46 = arith.constant 0 : index
    %70 = vector.load %arg11[%69, %c0_45, %c0_46] : memref<8x16x128xf32, #tpu.memory_space<vmem>>, vector<1x16x128xf32>
    %71 = vector.shape_cast %70 : vector<1x16x128xf32> to vector<16x128xf32>
    %cst_47 = arith.constant dense<0.000000e+00> : vector<16x128xf32>
    %72 = tpu.matmul %64, %9, %cst_47 {dimension_numbers = #tpu.dot_dimension_numbers<[1], [0], [0], [1], [0, 0, 1, 1], [], []>} : vector<16x128xf32>, vector<128x128xf32>, vector<16x128xf32> -> vector<16x128xf32>
    %73 = arith.addf %71, %72 : vector<16x128xf32>
    %c7_i32 = arith.constant 7 : i32
    %74 = arith.index_cast %c7_i32 : i32 to index
    %c0_48 = arith.constant 0 : index
    %c0_49 = arith.constant 0 : index
    %75 = vector.load %arg9[%74, %c0_48, %c0_49] : memref<8x16x128xf32, #tpu.memory_space<vmem>>, vector<1x16x128xf32>
    %76 = vector.shape_cast %75 : vector<1x16x128xf32> to vector<16x128xf32>
    %77 = vector.shape_cast %73 : vector<16x128xf32> to vector<1x16x128xf32>
    tpu.vector_store %arg9[%74, %c0_48, %c0_49], %77 {strides = array<i32>} : memref<8x16x128xf32, #tpu.memory_space<vmem>>, vector<1x16x128xf32>,
    %78 = arith.index_cast %c7_i32 : i32 to index
    %c0_50 = arith.constant 0 : index
    %c0_51 = arith.constant 0 : index
    %79 = vector.load %arg11[%78, %c0_50, %c0_51] : memref<8x16x128xf32, #tpu.memory_space<vmem>>, vector<1x16x128xf32>
    %80 = vector.shape_cast %79 : vector<1x16x128xf32> to vector<16x128xf32>
    %cst_52 = arith.constant dense<0.000000e+00> : vector<16x128xf32>
    %81 = tpu.matmul %73, %9, %cst_52 {dimension_numbers = #tpu.dot_dimension_numbers<[1], [0], [0], [1], [0, 0, 1, 1], [], []>} : vector<16x128xf32>, vector<128x128xf32>, vector<16x128xf32> -> vector<16x128xf32>
    %82 = arith.addf %80, %81 : vector<16x128xf32>
    %c8_i32 = arith.constant 8 : i32
    %c0_53 = arith.constant 0 : index
    %c0_54 = arith.constant 0 : index
    %83 = vector.load %arg10[%c0_53, %c0_54] : memref<16x128xf32, #tpu.memory_space<vmem>>, vector<16x128xf32>
    tpu.vector_store %arg10[%c0_53, %c0_54], %82 {strides = array<i32>} : memref<16x128xf32, #tpu.memory_space<vmem>>, vector<16x128xf32>,
    %c0_55 = arith.constant 0 : index
    %c0_56 = arith.constant 0 : index
    %c0_57 = arith.constant 0 : index
    %84 = vector.load %arg9[%c0_55, %c0_56, %c0_57] : memref<8x16x128xf32, #tpu.memory_space<vmem>>, vector<8x16x128xf32>
    %85 = vector.shape_cast %84 : vector<8x16x128xf32> to vector<128x128xf32>
    %c0_58 = arith.constant 0 : index
    %c0_59 = arith.constant 0 : index
    %c0_60 = arith.constant 0 : index
    %86 = vector.load %arg1[%c0_58, %c0_59, %c0_60] : memref<8x16x16xf32, #tpu.memory_space<vmem>>, vector<8x16x16xf32>
    %87 = vector.shape_cast %86 : vector<8x16x16xf32> to vector<128x16xf32>
    %c0_61 = arith.constant 0 : index
    %c0_62 = arith.constant 0 : index
    %88 = vector.load %arg4[%c0_61, %c0_62] : memref<16x128xf32, #tpu.memory_space<vmem>>, vector<16x128xf32>
    %cst_63 = arith.constant dense<0.000000e+00> : vector<128x128xf32>
    %89 = tpu.matmul %87, %88, %cst_63 {dimension_numbers = #tpu.dot_dimension_numbers<[1], [0], [0], [1], [0, 0, 1, 1], [], []>} : vector<128x16xf32>, vector<16x128xf32>, vector<128x128xf32> -> vector<128x128xf32>
    %c0_64 = arith.constant 0 : index
    %c0_65 = arith.constant 0 : index
    %90 = vector.load %arg6[%c0_64, %c0_65] : memref<128x128xf32, #tpu.memory_space<vmem>>, vector<128x128xf32>
    %cst_66 = arith.constant dense<0.000000e+00> : vector<128x128xf32>
    %91 = tpu.matmul %85, %90, %cst_66 {dimension_numbers = #tpu.dot_dimension_numbers<[1], [0], [0], [1], [0, 0, 1, 1], [], []>} : vector<128x128xf32>, vector<128x128xf32>, vector<128x128xf32> -> vector<128x128xf32>
    %92 = arith.addf %89, %91 : vector<128x128xf32>
    %c0_67 = arith.constant 0 : index
    %c0_68 = arith.constant 0 : index
    %93 = vector.load %arg8[%c0_67, %c0_68] : memref<1x128xf32, #tpu.memory_space<vmem>>, vector<1x128xf32>
    %94 = vector.broadcast %93 : vector<1x128xf32> to vector<128x128xf32>
    %95 = arith.addf %92, %94 : vector<128x128xf32>
    %cst_69 = arith.constant dense<0xFF800000> : vector<128xf32>
    %96 = vector.multi_reduction <maximumf>, %95, %cst_69 [1] : vector<128x128xf32> to vector<128xf32>
    %97 = vector.shape_cast %96 : vector<128xf32> to vector<128x1xf32>
    %98 = vector.broadcast %97 : vector<128x1xf32> to vector<128x128xf32>
    %99 = arith.subf %95, %98 : vector<128x128xf32>
    %100 = math.exp %99 : vector<128x128xf32>
    %cst_70 = arith.constant dense<0.000000e+00> : vector<128xf32>
    %101 = vector.multi_reduction <add>, %100, %cst_70 [1] : vector<128x128xf32> to vector<128xf32>
    %102 = vector.shape_cast %101 : vector<128xf32> to vector<128x1xf32>
    %103 = math.log %102 : vector<128x1xf32>
    %104 = vector.broadcast %103 : vector<128x1xf32> to vector<128x128xf32>
    %105 = arith.subf %99, %104 : vector<128x128xf32>
    %106 = vector.shape_cast %105 : vector<128x128xf32> to vector<8x16x128xf32>
    %c0_71 = arith.constant 0 : index
    %c0_72 = arith.constant 0 : index
    %c0_73 = arith.constant 0 : index
    %107 = vector.load %arg9[%c0_71, %c0_72, %c0_73] : memref<8x16x128xf32, #tpu.memory_space<vmem>>, vector<8x16x128xf32>
    tpu.vector_store %arg9[%c0_71, %c0_72, %c0_73], %106 {strides = array<i32>} : memref<8x16x128xf32, #tpu.memory_space<vmem>>, vector<8x16x128xf32>,
    return
  }
  func.func @transform_0(%arg0: i32) -> (i32, i32, i32) {
    %c0_i32 = arith.constant 0 : i32
    %c0_i32_0 = arith.constant 0 : i32
    %c0_i32_1 = arith.constant 0 : i32
    return %c0_i32, %arg0, %c0_i32_0 : i32, i32, i32
  }
  func.func @transform_1(%arg0: i32) -> (i32, i32) {
    %c0_i32 = arith.constant 0 : i32
    %c0_i32_0 = arith.constant 0 : i32
    return %arg0, %c0_i32 : i32, i32
  }
  func.func @transform_2(%arg0: i32) -> (i32, i32) {
    %c0_i32 = arith.constant 0 : i32
    %c0_i32_0 = arith.constant 0 : i32
    %c0_i32_1 = arith.constant 0 : i32
    return %c0_i32, %c0_i32_0 : i32, i32
  }
  func.func @transform_3(%arg0: i32) -> (i32, i32) {
    %c0_i32 = arith.constant 0 : i32
    %c0_i32_0 = arith.constant 0 : i32
    %c0_i32_1 = arith.constant 0 : i32
    return %c0_i32, %c0_i32_0 : i32, i32
  }
  func.func @transform_4(%arg0: i32) -> (i32, i32) {
    %c0_i32 = arith.constant 0 : i32
    %c0_i32_0 = arith.constant 0 : i32
    %c0_i32_1 = arith.constant 0 : i32
    return %c0_i32, %c0_i32_0 : i32, i32
  }
  func.func @transform_5(%arg0: i32) -> (i32, i32) {
    %c0_i32 = arith.constant 0 : i32
    %c0_i32_0 = arith.constant 0 : i32
    %c0_i32_1 = arith.constant 0 : i32
    return %c0_i32, %c0_i32_0 : i32, i32
  }
  func.func @transform_6(%arg0: i32) -> (i32, i32) {
    %c0_i32 = arith.constant 0 : i32
    %c0_i32_0 = arith.constant 0 : i32
    %c0_i32_1 = arith.constant 0 : i32
    return %c0_i32, %c0_i32_0 : i32, i32
  }
  func.func @transform_7(%arg0: i32) -> (i32, i32) {
    %c0_i32 = arith.constant 0 : i32
    %c0_i32_0 = arith.constant 0 : i32
    %c0_i32_1 = arith.constant 0 : i32
    return %c0_i32, %c0_i32_0 : i32, i32
  }
  func.func @transform_8(%arg0: i32) -> (i32, i32, i32) {
    %c0_i32 = arith.constant 0 : i32
    %c0_i32_0 = arith.constant 0 : i32
    %c0_i32_1 = arith.constant 0 : i32
    return %c0_i32, %arg0, %c0_i32_0 : i32, i32, i32
  }
  func.func @transform_9(%arg0: i32) -> (i32, i32) {
    %c0_i32 = arith.constant 0 : i32
    %c0_i32_0 = arith.constant 0 : i32
    return %arg0, %c0_i32 : i32, i32
  }
}

</mosaic_0001>

<bundles_post_ra>
// kernel: manual_rnn_forward_seq.1
= control target key start
LH: loop header
LB: loop body
LE: loop exit
PB: predicated region body
PF: predicated region fallthrough
CT: control target
= control target key end

     0   :  { %15 = vsyncpa [#allocation4], 0  ;;  %s3173_s0 = inlined_call_operand.hbm [shape: f32[8,16,16], index: 0, kind: input, shape index: {}]   ;;  %s3174_s1 = inlined_call_operand.vmem [shape: f32[16,128], index: 1, kind: input, shape index: {}]   ;;  %s3175_s2 = inlined_call_operand.vmem [shape: f32[16,128], index: 2, kind: input, shape index: {}]   ;;  %s3176_s3 = inlined_call_operand.vmem [shape: f32[16,128], index: 3, kind: input, shape index: {}]   ;;  %s3177_s4 = inlined_call_operand.hbm [shape: f32[128,128], index: 4, kind: input, shape index: {}]   ;;  %s3178_s5 = inlined_call_operand.hbm [shape: f32[128,128], index: 5, kind: input, shape index: {}]   ;;  %s3179_s6 = inlined_call_operand.vmem [shape: f32[1,128], index: 6, kind: input, shape index: {}]   ;;  %s3180_s7 = inlined_call_operand.vmem [shape: f32[1,128], index: 7, kind: input, shape index: {}]   ;;  %s3181_s8 = inlined_call_operand.vmem [shape: f32[8,16,128], index: 8, kind: output, shape index: {0}]   ;;  %s3182_s9 = inlined_call_operand.hbm [shape: f32[16,128], index: 9, kind: output, shape index: {1}]  }
   0x1   :  { %16 = vsyncpa [#allocation7], 0 }
   0x2   :  { %17 = vsyncpa [#allocation5], 0  ;;  %s2407_s30 = smov [#allocation6]   ;;  %s2408_s11 = smov [#allocation3]  }
   0x3   :  { %s41_s10 = sshll.u32 %s2407_s30, 4  ;;  %s23_s12 = sshll.u32 %s2408_s11, 4  ;;  %s42_s10 = int_to_ptr.vmem [resolvable:$true] %s41_s10  ;;  %s24_s12 = int_to_ptr.vmem [resolvable:$true] %s23_s12 }
   0x4   :  { %s2329_s13 = scalar_lea.vmem %s42_s10, 2048  ;;  %p2334_p1 = scmp.lt.s32.totalorder %s42_s10, %s42_s10 }
   0x5   :  { %p2330_p0 = scmp.ne.s32.totalorder %s42_s10, %s2329_s13  ;;  %p2335_p2 = scmp.lt.s32.totalorder %s2329_s13, %s2329_s13 }
   0x7   :  { %p2336_p3 = por %p2335_p2, %p2334_p1 }
   0x9   :  { %p2337_p4 = pnand %p2336_p3, %p2330_p0 }
   0xb   :  { %2340 = shalt.err (!%p2337_p4)
}
   0xc   :  { %s2409_s14 = smov 128   ;;  %s2410_s15 = smov 8  }
   0xd   :  { %47 = dma.hbm_to_vmem [thread:$0]  %s3177_s4, 2048, %s42_s10, [#allocation7], %s2409_s14, %s2409_s14, %s2410_s15  }
   0xe   :  { %s2349_s18 = scalar_lea.vmem %s24_s12, 2048  ;;  %p2354_p6 = scmp.lt.s32.totalorder %s24_s12, %s24_s12 }
   0xf   :  { %p2350_p5 = scmp.ne.s32.totalorder %s24_s12, %s2349_s18  ;;  %p2355_p7 = scmp.lt.s32.totalorder %s2349_s18, %s2349_s18 }
  0x11   :  { %p2356_p8 = por %p2355_p7, %p2354_p6 }
  0x13   :  { %p2357_p9 = pnand %p2356_p8, %p2350_p5 }
  0x15   :  { %2360 = shalt.err (!%p2357_p9)
}
  0x16   :  { %29 = dma.hbm_to_vmem [thread:$0]  %s3173_s0, 2048, %s24_s12, [#allocation4], %s2409_s14, %s2409_s14, %s2410_s15  }
  0x17   :  { %s2411_s21 = smov [#allocation8]  }
  0x18   :  { %s53_s22 = sshll.u32 %s2411_s21, 4  ;;  %s54_s22 = int_to_ptr.vmem [resolvable:$true] %s53_s22 }
  0x19   :  { %s2369_s23 = scalar_lea.vmem %s54_s22, 2048  ;;  %p2374_p11 = scmp.lt.s32.totalorder %s54_s22, %s54_s22 }
  0x1a   :  { %p2370_p10 = scmp.ne.s32.totalorder %s54_s22, %s2369_s23  ;;  %p2375_p12 = scmp.lt.s32.totalorder %s2369_s23, %s2369_s23 }
  0x1c   :  { %p2376_p13 = por %p2375_p12, %p2374_p11 }
  0x1e   :  { %p2377_p0 = pnand %p2376_p13, %p2370_p10 }
  0x20   :  { %2380 = shalt.err (!%p2377_p0)
}
  0x21   :  { %59 = dma.hbm_to_vmem [thread:$0]  %s3178_s5, 2048, %s54_s22, [#allocation7], %s2409_s14, %s2409_s14, %s2410_s15  }
  0x22   :  { %2401 = dma.done.wait [#allocation4], 2048  }
  0x23   :  { %2402 = vsyncadd [#allocation4], 4294965248 }
  0x24   :  { %2403 = dma.done.wait [#allocation7], 4096  }
  0x25   :  { %2404 = vsyncadd [#allocation7], 4294963200  ;;  %v2481_v0 = vld [vmem:[#allocation6 + $0x78] sm:$0xff]  ;;  %v2483_v1 = vld [vmem:[#allocation6 + $0x70] sm:$0xff]  ;;  %vm98_vm0 = vcmask 130048  }
  0x26   :  { %1887 = vmatprep.subr.mxu1 %v2481_v0  ;;  %v2487_v2 = vld [vmem:[#allocation6 + $0x68] sm:$0xff]  ;;  %v2491_v3 = vld [vmem:[#allocation6 + $0x60] sm:$0xff]  ;;  %v2501_v6 = vld [vmem:[#allocation6 + $0x58] sm:$0xff] }
  0x27   :  { %1888 = vmatpush3.msra.mxu1 %v2481_v0  ;;  %v90_v4 = vld [vmem:[%s3175_s2 + $0x8] sm:$0xff]  ;;  %v89_v5 = vld [vmem:[%s3175_s2] sm:$0xff]  ;;  %v2509_v9 = vld [vmem:[#allocation6 + $0x50] sm:$0xff] }
  0x28   :  { %1889 = vmatprep.subr.mxu1 %v2483_v1  ;;  %1859 = vmatprep.subr.mxu0 %v90_v4  ;;  %v2503_v7 = vld [vmem:[#allocation3] sm:$0xff]  ;;  %v2506_v8 = vld [vmem:[#allocation3 + $0x8] sm:$0xff]  ;;  %v2526_v12 = vld [vmem:[#allocation3 + $0x10] sm:$0xff] }
  0x29   :  { %1890 = vmatpush3.msra.mxu1 %v2483_v1  ;;  %1860 = vmatpush3.msra.mxu0 %v90_v4  ;;  %v2514_v10 = vld [vmem:[%s3174_s1] sm:$0xff]  ;;  %v2520_v11 = vld [vmem:[#allocation6 + $0x48] sm:$0xff]  ;;  %v2534_v14 = vld [vmem:[#allocation3 + $0x18] sm:$0xff] }
  0x2a   :  { %1891 = vmatprep.subr.mxu1 %v2487_v2  ;;  %1861 = vmatprep.subr.mxu0 %v89_v5  ;;  %v2529_v13 = vld [vmem:[#allocation6 + $0x40] sm:$0xff]  ;;  %v2537_v15 = vld [vmem:[#allocation6 + $0x38] sm:$0xff]  ;;  %v2544_v16 = vld [vmem:[#allocation6 + $0x30] sm:$0xff] }
  0x2b   :  { %1892 = vmatpush3.msra.mxu1 %v2487_v2  ;;  %1862 = vmatpush3.msra.mxu0 %v89_v5  ;;  %v2550_v17 = vld [vmem:[#allocation3 + $0x20] sm:$0xff]  ;;  %v2553_v18 = vld [vmem:[#allocation6 + $0x28] sm:$0xff]  ;;  %v2568_v21 = vld [vmem:[#allocation6 + $0x18] sm:$0xff] }
  0x2c   :  { %1893 = vmatprep.subr.mxu1 %v2491_v3  ;;  %1863 = vmatprep.mubr.msk.f32.mxu0 %vm98_vm0, %v2503_v7  ;;  %v2558_v19 = vld [vmem:[#allocation3 + $0x28] sm:$0xff]  ;;  %v2561_v20 = vld [vmem:[#allocation6 + $0x20] sm:$0xff]  ;;  %v2574_v22 = vld [vmem:[#allocation3 + $0x30] sm:$0xff] }
  0x2d   :  { %1894 = vmatpush3.msra.mxu1 %v2491_v3  ;;  %1864 = vmatmul.mubr.msk.f32.vlgmr.msra.gmra.mxu0 %vm98_vm0, %v2506_v8  ;;  %v2577_v23 = vld [vmem:[#allocation6 + $0x10] sm:$0xff]  ;;  %v2582_v24 = vld [vmem:[#allocation3 + $0x38] sm:$0xff]  ;;  %v2585_v25 = vld [vmem:[#allocation6 + $0x8] sm:$0xff] }
  0x2e   :  { %1895 = vmatprep.subr.mxu1 %v2501_v6  ;;  %1919 = vmatprep.mubr.f32.mxu1 %v2514_v10  ;;  %v2592_v26 = vld [vmem:[#allocation6] sm:$0xff]  ;;  %v2604_v28 = vld [vmem:[%s3174_s1 + $0x8] sm:$0xff]  ;;  %v2614_v30 = vld [vmem:[#allocation3 + $0x50] sm:$0xff] }
  0x2f   :  { %1896 = vmatpush3.msra.mxu1 %v2501_v6  ;;  %1922 = vmatprep.subr.mxu0 %v2481_v0  ;;  %v2598_v27 = vld [vmem:[#allocation3 + $0x40] sm:$0xff]  ;;  %v2609_v29 = vld [vmem:[#allocation3 + $0x48] sm:$0xff]  ;;  %v2624_v31 = vld [vmem:[#allocation3 + $0x58] sm:$0xff] }
  0x30   :  { %1897 = vmatprep.subr.mxu1 %v2509_v9  ;;  %1923 = vmatpush3.msra.mxu0 %v2481_v0  ;;  %v2627_v32 = vld [vmem:[#allocation3 + $0x60] sm:$0xff]  ;;  %v2681_v33 = vld [vmem:[#allocation3 + $0x68] sm:$0xff]  ;;  %v2685_v34 = vld [vmem:[#allocation3 + $0x70] sm:$0xff] }
  0x31   :  { %1898 = vmatpush3.msra.mxu1 %v2509_v9  ;;  %1866 = vmatprep.mubr.msk.f32.mxu0 %vm98_vm0, %v2526_v12  ;;  %v2687_v35 = vld [vmem:[#allocation3 + $0x78] sm:$0xff]  ;;  %v2696_v37 = vld [vmem:[%s3179_s6] ss:$0 sm:$0xff] }
  0x32   :  { %1899 = vmatprep.subr.mxu1 %v2520_v11  ;;  %1924 = vmatprep.subr.mxu0 %v2483_v1 }
  0x33   :  { %1900 = vmatpush3.msra.mxu1 %v2520_v11  ;;  %1867 = vmatmul.mubr.msk.f32.gmra.mxu0 %vm98_vm0, %v2534_v14 }
  0x34   :  { %1901 = vmatprep.subr.mxu1 %v2529_v13  ;;  %1925 = vmatpush3.msra.mxu0 %v2483_v1 }
  0x35   :  { %1902 = vmatpush3.msra.mxu1 %v2529_v13  ;;  %1926 = vmatprep.subr.mxu0 %v2487_v2 }
  0x36   :  { %1903 = vmatprep.subr.mxu1 %v2537_v15  ;;  %1927 = vmatpush3.msra.mxu0 %v2487_v2 }
  0x37   :  { %1904 = vmatpush3.msra.mxu1 %v2537_v15  ;;  %1869 = vmatprep.mubr.msk.f32.mxu0 %vm98_vm0, %v2550_v17 }
  0x38   :  { %1905 = vmatprep.subr.mxu1 %v2544_v16  ;;  %1928 = vmatprep.subr.mxu0 %v2491_v3 }
  0x39   :  { %1906 = vmatpush3.msra.mxu1 %v2544_v16  ;;  %1870 = vmatmul.mubr.msk.f32.gmra.mxu0 %vm98_vm0, %v2558_v19 }
  0x3a   :  { %1907 = vmatprep.subr.mxu1 %v2553_v18  ;;  %1929 = vmatpush3.msra.mxu0 %v2491_v3 }
  0x3b   :  { %1908 = vmatpush3.msra.mxu1 %v2553_v18  ;;  %1930 = vmatprep.subr.mxu0 %v2501_v6 }
  0x3c   :  { %1909 = vmatprep.subr.mxu1 %v2561_v20  ;;  %1931 = vmatpush3.msra.mxu0 %v2501_v6 }
  0x3d   :  { %1910 = vmatpush3.msra.mxu1 %v2561_v20  ;;  %1872 = vmatprep.mubr.msk.f32.mxu0 %vm98_vm0, %v2574_v22 }
  0x3e   :  { %1911 = vmatprep.subr.mxu1 %v2568_v21  ;;  %1932 = vmatprep.subr.mxu0 %v2509_v9 }
  0x3f   :  { %1912 = vmatpush3.msra.mxu1 %v2568_v21  ;;  %1873 = vmatmul.mubr.msk.f32.gmra.mxu0 %vm98_vm0, %v2582_v24 }
  0x40   :  { %1913 = vmatprep.subr.mxu1 %v2577_v23  ;;  %1933 = vmatpush3.msra.mxu0 %v2509_v9 }
  0x41   :  { %1914 = vmatpush3.msra.mxu1 %v2577_v23  ;;  %1934 = vmatprep.subr.mxu0 %v2520_v11 }
  0x42   :  { %1915 = vmatprep.subr.mxu1 %v2585_v25  ;;  %1935 = vmatpush3.msra.mxu0 %v2520_v11 }
  0x43   :  { %1916 = vmatpush3.msra.mxu1 %v2585_v25  ;;  %1875 = vmatprep.mubr.msk.f32.mxu0 %vm98_vm0, %v2598_v27 }
  0x44   :  { %1917 = vmatprep.subr.mxu1 %v2592_v26  ;;  %1936 = vmatprep.subr.mxu0 %v2529_v13 }
  0x45   :  { %1918 = vmatpush3.msra.mxu1 %v2592_v26  ;;  %1876 = vmatmul.mubr.msk.f32.gmra.mxu0 %vm98_vm0, %v2609_v29 }
  0x46   :  { %1920 = vmatmul.mubr.f32.vlgmr.msra.gmra.mxu1 %v2604_v28  ;;  %1957 = vmatprep.subr.mxu1 %v2481_v0 }
  0x47   :  { %1937 = vmatpush3.msra.mxu0 %v2529_v13  ;;  %1878 = vmatprep.mubr.msk.f32.mxu0 %vm98_vm0, %v2614_v30 }
  0x48   :  { %1938 = vmatprep.subr.mxu0 %v2537_v15  ;;  %1958 = vmatpush3.msra.mxu1 %v2481_v0 }
  0x49   :  { %1939 = vmatpush3.msra.mxu0 %v2537_v15  ;;  %1959 = vmatprep.subr.mxu1 %v2483_v1 }
  0x4a   :  { %1940 = vmatprep.subr.mxu0 %v2544_v16  ;;  %1879 = vmatmul.mubr.msk.f32.gmra.mxu0 %vm98_vm0, %v2624_v31 }
  0x4b   :  { %1941 = vmatpush3.msra.mxu0 %v2544_v16  ;;  %1881 = vmatprep.mubr.msk.f32.mxu0 %vm98_vm0, %v2627_v32 }
  0x4c   :  { %1942 = vmatprep.subr.mxu0 %v2553_v18  ;;  %1960 = vmatpush3.msra.mxu1 %v2483_v1 }
  0x4d   :  { %1943 = vmatpush3.msra.mxu0 %v2553_v18  ;;  %1961 = vmatprep.subr.mxu1 %v2487_v2 }
  0x4e   :  { %1944 = vmatprep.subr.mxu0 %v2561_v20  ;;  %1962 = vmatpush3.msra.mxu1 %v2487_v2 }
  0x4f   :  { %1945 = vmatpush3.msra.mxu0 %v2561_v20  ;;  %1963 = vmatprep.subr.mxu1 %v2491_v3 }
  0x50   :  { %1946 = vmatprep.subr.mxu0 %v2568_v21  ;;  %1964 = vmatpush3.msra.mxu1 %v2491_v3 }
  0x51   :  { %1947 = vmatpush3.msra.mxu0 %v2568_v21  ;;  %1965 = vmatprep.subr.mxu1 %v2501_v6 }
  0x52   :  { %1948 = vmatprep.subr.mxu0 %v2577_v23  ;;  %1966 = vmatpush3.msra.mxu1 %v2501_v6 }
  0x53   :  { %1949 = vmatpush3.msra.mxu0 %v2577_v23  ;;  %1967 = vmatprep.subr.mxu1 %v2509_v9 }
  0x54   :  { %1950 = vmatprep.subr.mxu0 %v2585_v25  ;;  %1968 = vmatpush3.msra.mxu1 %v2509_v9 }
  0x55   :  { %1951 = vmatpush3.msra.mxu0 %v2585_v25  ;;  %1969 = vmatprep.subr.mxu1 %v2520_v11 }
  0x56   :  { %1952 = vmatprep.subr.mxu0 %v2592_v26  ;;  %1970 = vmatpush3.msra.mxu1 %v2520_v11 }
  0x57   :  { %1953 = vmatpush3.msra.mxu0 %v2592_v26  ;;  %1971 = vmatprep.subr.mxu1 %v2529_v13 }
  0x58   :  { %1972 = vmatpush3.msra.mxu1 %v2529_v13  ;;  %1992 = vmatprep.subr.mxu0 %v2481_v0 }
  0x59   :  { %1973 = vmatprep.subr.mxu1 %v2537_v15  ;;  %1882 = vmatmul.mubr.msk.f32.gmra.mxu0 %vm98_vm0, %v2681_v33 }
  0x5a   :  { %1974 = vmatpush3.msra.mxu1 %v2537_v15  ;;  %1884 = vmatprep.mubr.msk.f32.mxu0 %vm98_vm0, %v2685_v34 }
  0x5b   :  { %1975 = vmatprep.subr.mxu1 %v2544_v16 }
  0x5c   :  { %1976 = vmatpush3.msra.mxu1 %v2544_v16 }
  0x5d   :  { %1977 = vmatprep.subr.mxu1 %v2553_v18  ;;  %1885 = vmatmul.mubr.msk.f32.gmra.mxu0 %vm98_vm0, %v2687_v35 }
  0x5e   :  { %1978 = vmatpush3.msra.mxu1 %v2553_v18 }
  0x5f   :  { %1979 = vmatprep.subr.mxu1 %v2561_v20 }
  0x60   :  { %1980 = vmatpush3.msra.mxu1 %v2561_v20 }
  0x61   :  { %1981 = vmatprep.subr.mxu1 %v2568_v21 }
  0x62   :  { %1982 = vmatpush3.msra.mxu1 %v2568_v21 }
  0x63   :  { %1983 = vmatprep.subr.mxu1 %v2577_v23 }
  0x64   :  { %1984 = vmatpush3.msra.mxu1 %v2577_v23 }
  0x65   :  { %1985 = vmatprep.subr.mxu1 %v2585_v25 }
  0x66   :  { %1986 = vmatpush3.msra.mxu1 %v2585_v25 }
  0x67   :  { %1987 = vmatprep.subr.mxu1 %v2592_v26 }
  0x68   :  { %1988 = vmatpush3.msra.mxu1 %v2592_v26 }
  0x69   :  { %2027 = vmatprep.subr.mxu1 %v2481_v0 }
  0xed   :  { %v1865_v36 = vpop.f32.mrf.mxu0 }
  0xee   :  { %v219_v39 = vadd.f32 %v1865_v36, %v2696_v37 }
  0xef   :  { %v213_v38 = vpop.f32.mrf.mxu0 }
  0xf0   :  { %v214_v41 = vadd.f32 %v2696_v37, %v213_v38 }
  0xf3   :  { %v1868_v45 = vpop.f32.mrf.mxu0 }
  0xf4   :  { %v229_v61 = vadd.f32 %v1868_v45, %v2696_v37 }
  0xf5   :  { %v223_v46 = vpop.f32.mrf.mxu0 }
  0xf6   :  { %v224_v60 = vadd.f32 %v2696_v37, %v223_v46 }
  0xf9   :  { %v1871_v47 = vpop.f32.mrf.mxu0 }
  0xfa   :  { %v239_v38 = vadd.f32 %v1871_v47, %v2696_v37 }
  0xfb   :  { %v233_v48 = vpop.f32.mrf.mxu0 }
  0xfc   :  { %v234_v36 = vadd.f32 %v2696_v37, %v233_v48 }
  0xff   :  { %v2738_v49 = vpop.f32.mrf.mxu0 }
 0x100   :  { %v249_v46 = vadd.f32 %v2738_v49, %v2696_v37 }
 0x101   :  { %v2740_v50 = vpop.f32.mrf.mxu0 }
 0x102   :  { %v244_v45 = vadd.f32 %v2696_v37, %v2740_v50 }
 0x105   :  { %v2742_v51 = vpop.f32.mrf.mxu0 }
 0x106   :  { %v1921_v40 = vpop.f32.mrf.mxu1 }
 0x107   :  { %v2702_v44 = vadd.f32 %v1921_v40, %v219_v39  ;;  %v2744_v52 = vpop.f32.mrf.mxu0 }
 0x108   :  { %v396_v42 = vpop.f32.mrf.mxu1  ;;  %v254_v50 = vadd.f32 %v2696_v37, %v2744_v52  ;;  %v1027_v52 = vld [vmem:[#allocation8 + $0x18] sm:$0xff] }
 0x109   :  { %v2700_v43 = vadd.f32 %v396_v42, %v214_v41 }
 0x10a   :  { %v2746_v53 = vpop.f32.mrf.mxu0 }
 0x10b   :  { %1954 = vmatprep.mubr.f32.mxu0 %v2700_v43 }
 0x10c   :  { %1955 = vmatmul.mubr.f32.vlgmr.msra.gmra.mxu0 %v2702_v44  ;;  %v2748_v54 = vpop.f32.mrf.mxu0 }
 0x10d   :  { %1993 = vmatpush3.msra.mxu0 %v2481_v0 }
 0x10e   :  { %1994 = vmatprep.subr.mxu0 %v2483_v1 }
 0x10f   :  { %1995 = vmatpush3.msra.mxu0 %v2483_v1 }
 0x110   :  { %1996 = vmatprep.subr.mxu0 %v2487_v2 }
 0x111   :  { %1997 = vmatpush3.msra.mxu0 %v2487_v2 }
 0x112   :  { %1998 = vmatprep.subr.mxu0 %v2491_v3 }
 0x113   :  { %1999 = vmatpush3.msra.mxu0 %v2491_v3 }
 0x114   :  { %2000 = vmatprep.subr.mxu0 %v2501_v6 }
 0x115   :  { %2001 = vmatpush3.msra.mxu0 %v2501_v6 }
 0x116   :  { %2002 = vmatprep.subr.mxu0 %v2509_v9 }
 0x117   :  { %2003 = vmatpush3.msra.mxu0 %v2509_v9 }
 0x118   :  { %2004 = vmatprep.subr.mxu0 %v2520_v11 }
 0x119   :  { %2005 = vmatpush3.msra.mxu0 %v2520_v11  ;;  %v2750_v55 = vpop.f32.mrf.mxu0 }
 0x11a   :  { %2006 = vmatprep.subr.mxu0 %v2529_v13 }
 0x11b   :  { %2007 = vmatpush3.msra.mxu0 %v2529_v13  ;;  %v2752_v56 = vpop.f32.mrf.mxu0 }
 0x11c   :  { %2008 = vmatprep.subr.mxu0 %v2537_v15 }
 0x11d   :  { %2009 = vmatpush3.msra.mxu0 %v2537_v15  ;;  %v2754_v57 = vpop.f32.mrf.mxu0 }
 0x11e   :  { %2010 = vmatprep.subr.mxu0 %v2544_v16 }
 0x11f   :  { %2011 = vmatpush3.msra.mxu0 %v2544_v16  ;;  %v2756_v58 = vpop.f32.mrf.mxu0 }
 0x120   :  { %2012 = vmatprep.subr.mxu0 %v2553_v18 }
 0x121   :  { %2013 = vmatpush3.msra.mxu0 %v2553_v18 }
 0x122   :  { %2014 = vmatprep.subr.mxu0 %v2561_v20 }
 0x123   :  { %2015 = vmatpush3.msra.mxu0 %v2561_v20 }
 0x124   :  { %2016 = vmatprep.subr.mxu0 %v2568_v21 }
 0x125   :  { %2017 = vmatpush3.msra.mxu0 %v2568_v21 }
 0x126   :  { %2018 = vmatprep.subr.mxu0 %v2577_v23 }
 0x127   :  { %2019 = vmatpush3.msra.mxu0 %v2577_v23 }
 0x128   :  { %2020 = vmatprep.subr.mxu0 %v2585_v25 }
 0x129   :  { %2021 = vmatpush3.msra.mxu0 %v2585_v25 }
 0x12a   :  { %2022 = vmatprep.subr.mxu0 %v2592_v26 }
 0x12b   :  { %2023 = vmatpush3.msra.mxu0 %v2592_v26 }
 0x12c   :  { %2062 = vmatprep.subr.mxu0 %v2481_v0 }
 0x1cc   :  { %v1956_v59 = vpop.f32.mrf.mxu0 }
 0x1cd   :  { %v2762_v4 = vadd.f32 %v1956_v59, %v229_v61 }
 0x1ce   :  { %v479_v62 = vpop.f32.mrf.mxu0 }
 0x1cf   :  { %v2760_v63 = vadd.f32 %v479_v62, %v224_v60  ;;  %v259_v60 = vadd.f32 %v2742_v51, %v2696_v37  ;;  %v1028_v51 = vld [vmem:[#allocation8 + $0x20] sm:$0xff] }
 0x1d1   :  { %1989 = vmatprep.mubr.f32.mxu1 %v2760_v63 }
 0x1d2   :  { %1990 = vmatmul.mubr.f32.vlgmr.msra.gmra.mxu1 %v2762_v4 }
 0x1d3   :  { %2028 = vmatpush3.msra.mxu1 %v2481_v0 }
 0x1d4   :  { %2029 = vmatprep.subr.mxu1 %v2483_v1 }
 0x1d5   :  { %2030 = vmatpush3.msra.mxu1 %v2483_v1 }
 0x1d6   :  { %2031 = vmatprep.subr.mxu1 %v2487_v2 }
 0x1d7   :  { %2032 = vmatpush3.msra.mxu1 %v2487_v2 }
 0x1d8   :  { %2033 = vmatprep.subr.mxu1 %v2491_v3 }
 0x1d9   :  { %2034 = vmatpush3.msra.mxu1 %v2491_v3 }
 0x1da   :  { %2035 = vmatprep.subr.mxu1 %v2501_v6 }
 0x1db   :  { %2036 = vmatpush3.msra.mxu1 %v2501_v6 }
 0x1dc   :  { %2037 = vmatprep.subr.mxu1 %v2509_v9 }
 0x1dd   :  { %2038 = vmatpush3.msra.mxu1 %v2509_v9 }
 0x1de   :  { %2039 = vmatprep.subr.mxu1 %v2520_v11 }
 0x1df   :  { %2040 = vmatpush3.msra.mxu1 %v2520_v11 }
 0x1e0   :  { %2041 = vmatprep.subr.mxu1 %v2529_v13 }
 0x1e1   :  { %2042 = vmatpush3.msra.mxu1 %v2529_v13 }
 0x1e2   :  { %2043 = vmatprep.subr.mxu1 %v2537_v15 }
 0x1e3   :  { %2044 = vmatpush3.msra.mxu1 %v2537_v15 }
 0x1e4   :  { %2045 = vmatprep.subr.mxu1 %v2544_v16 }
 0x1e5   :  { %2046 = vmatpush3.msra.mxu1 %v2544_v16 }
 0x1e6   :  { %2047 = vmatprep.subr.mxu1 %v2553_v18 }
 0x1e7   :  { %2048 = vmatpush3.msra.mxu1 %v2553_v18 }
 0x1e8   :  { %2049 = vmatprep.subr.mxu1 %v2561_v20 }
 0x1e9   :  { %2050 = vmatpush3.msra.mxu1 %v2561_v20 }
 0x1ea   :  { %2051 = vmatprep.subr.mxu1 %v2568_v21 }
 0x1eb   :  { %2052 = vmatpush3.msra.mxu1 %v2568_v21 }
 0x1ec   :  { %2053 = vmatprep.subr.mxu1 %v2577_v23 }
 0x1ed   :  { %2054 = vmatpush3.msra.mxu1 %v2577_v23 }
 0x1ee   :  { %2055 = vmatprep.subr.mxu1 %v2585_v25 }
 0x1ef   :  { %2056 = vmatpush3.msra.mxu1 %v2585_v25 }
 0x1f0   :  { %2057 = vmatprep.subr.mxu1 %v2592_v26 }
 0x1f1   :  { %2058 = vmatpush3.msra.mxu1 %v2592_v26 }
 0x1f2   :  { %2097 = vmatprep.subr.mxu1 %v2481_v0 }
 0x292   :  { %v1991_v5 = vpop.f32.mrf.mxu1 }
 0x293   :  { %v2802_v41 = vadd.f32 %v1991_v5, %v239_v38 }
 0x294   :  { %v562_v39 = vpop.f32.mrf.mxu1 }
 0x295   :  { %v2800_v40 = vadd.f32 %v562_v39, %v234_v36  ;;  %v1024_v36 = vld [vmem:[#allocation8] sm:$0xff] }
 0x297   :  { %2024 = vmatprep.mubr.f32.mxu0 %v2800_v40 }
 0x298   :  { %2025 = vmatmul.mubr.f32.vlgmr.msra.gmra.mxu0 %v2802_v41 }
 0x299   :  { %2063 = vmatpush3.msra.mxu0 %v2481_v0 }
 0x29a   :  { %2064 = vmatprep.subr.mxu0 %v2483_v1 }
 0x29b   :  { %2065 = vmatpush3.msra.mxu0 %v2483_v1 }
 0x29c   :  { %2066 = vmatprep.subr.mxu0 %v2487_v2 }
 0x29d   :  { %2067 = vmatpush3.msra.mxu0 %v2487_v2 }
 0x29e   :  { %2068 = vmatprep.subr.mxu0 %v2491_v3 }
 0x29f   :  { %2069 = vmatpush3.msra.mxu0 %v2491_v3 }
 0x2a0   :  { %2070 = vmatprep.subr.mxu0 %v2501_v6 }
 0x2a1   :  { %2071 = vmatpush3.msra.mxu0 %v2501_v6 }
 0x2a2   :  { %2072 = vmatprep.subr.mxu0 %v2509_v9 }
 0x2a3   :  { %2073 = vmatpush3.msra.mxu0 %v2509_v9 }
 0x2a4   :  { %2074 = vmatprep.subr.mxu0 %v2520_v11 }
 0x2a5   :  { %2075 = vmatpush3.msra.mxu0 %v2520_v11 }
 0x2a6   :  { %2076 = vmatprep.subr.mxu0 %v2529_v13 }
 0x2a7   :  { %2077 = vmatpush3.msra.mxu0 %v2529_v13 }
 0x2a8   :  { %2078 = vmatprep.subr.mxu0 %v2537_v15 }
 0x2a9   :  { %2079 = vmatpush3.msra.mxu0 %v2537_v15 }
 0x2aa   :  { %2080 = vmatprep.subr.mxu0 %v2544_v16 }
 0x2ab   :  { %2081 = vmatpush3.msra.mxu0 %v2544_v16 }
 0x2ac   :  { %2082 = vmatprep.subr.mxu0 %v2553_v18 }
 0x2ad   :  { %2083 = vmatpush3.msra.mxu0 %v2553_v18 }
 0x2ae   :  { %2084 = vmatprep.subr.mxu0 %v2561_v20 }
 0x2af   :  { %2085 = vmatpush3.msra.mxu0 %v2561_v20 }
 0x2b0   :  { %2086 = vmatprep.subr.mxu0 %v2568_v21 }
 0x2b1   :  { %2087 = vmatpush3.msra.mxu0 %v2568_v21 }
 0x2b2   :  { %2088 = vmatprep.subr.mxu0 %v2577_v23 }
 0x2b3   :  { %2089 = vmatpush3.msra.mxu0 %v2577_v23 }
 0x2b4   :  { %2090 = vmatprep.subr.mxu0 %v2585_v25 }
 0x2b5   :  { %2091 = vmatpush3.msra.mxu0 %v2585_v25 }
 0x2b6   :  { %2092 = vmatprep.subr.mxu0 %v2592_v26 }
 0x2b7   :  { %2093 = vmatpush3.msra.mxu0 %v2592_v26 }
 0x2b8   :  { %2132 = vmatprep.subr.mxu0 %v2481_v0 }
 0x358   :  { %v2026_v42 = vpop.f32.mrf.mxu0 }
 0x359   :  { %v2844_v59 = vadd.f32 %v2026_v42, %v249_v46 }
 0x35a   :  { %v645_v47 = vpop.f32.mrf.mxu0 }
 0x35b   :  { %v2842_v48 = vadd.f32 %v645_v47, %v244_v45 }
 0x35d   :  { %2059 = vmatprep.mubr.f32.mxu1 %v2842_v48 }
 0x35e   :  { %2060 = vmatmul.mubr.f32.vlgmr.msra.gmra.mxu1 %v2844_v59 }
 0x35f   :  { %2098 = vmatpush3.msra.mxu1 %v2481_v0 }
 0x360   :  { %2099 = vmatprep.subr.mxu1 %v2483_v1 }
 0x361   :  { %2100 = vmatpush3.msra.mxu1 %v2483_v1 }
 0x362   :  { %2101 = vmatprep.subr.mxu1 %v2487_v2 }
 0x363   :  { %2102 = vmatpush3.msra.mxu1 %v2487_v2 }
 0x364   :  { %2103 = vmatprep.subr.mxu1 %v2491_v3 }
 0x365   :  { %2104 = vmatpush3.msra.mxu1 %v2491_v3 }
 0x366   :  { %2105 = vmatprep.subr.mxu1 %v2501_v6 }
 0x367   :  { %2106 = vmatpush3.msra.mxu1 %v2501_v6 }
 0x368   :  { %2107 = vmatprep.subr.mxu1 %v2509_v9 }
 0x369   :  { %2108 = vmatpush3.msra.mxu1 %v2509_v9 }
 0x36a   :  { %2109 = vmatprep.subr.mxu1 %v2520_v11 }
 0x36b   :  { %2110 = vmatpush3.msra.mxu1 %v2520_v11 }
 0x36c   :  { %2111 = vmatprep.subr.mxu1 %v2529_v13 }
 0x36d   :  { %2112 = vmatpush3.msra.mxu1 %v2529_v13 }
 0x36e   :  { %2113 = vmatprep.subr.mxu1 %v2537_v15 }
 0x36f   :  { %2114 = vmatpush3.msra.mxu1 %v2537_v15 }
 0x370   :  { %2115 = vmatprep.subr.mxu1 %v2544_v16 }
 0x371   :  { %2116 = vmatpush3.msra.mxu1 %v2544_v16 }
 0x372   :  { %2117 = vmatprep.subr.mxu1 %v2553_v18 }
 0x373   :  { %2118 = vmatpush3.msra.mxu1 %v2553_v18 }
 0x374   :  { %2119 = vmatprep.subr.mxu1 %v2561_v20 }
 0x375   :  { %2120 = vmatpush3.msra.mxu1 %v2561_v20 }
 0x376   :  { %2121 = vmatprep.subr.mxu1 %v2568_v21 }
 0x377   :  { %2122 = vmatpush3.msra.mxu1 %v2568_v21 }
 0x378   :  { %2123 = vmatprep.subr.mxu1 %v2577_v23 }
 0x379   :  { %2124 = vmatpush3.msra.mxu1 %v2577_v23 }
 0x37a   :  { %2125 = vmatprep.subr.mxu1 %v2585_v25 }
 0x37b   :  { %2126 = vmatpush3.msra.mxu1 %v2585_v25 }
 0x37c   :  { %2127 = vmatprep.subr.mxu1 %v2592_v26 }
 0x37d   :  { %2128 = vmatpush3.msra.mxu1 %v2592_v26 }
 0x41e   :  { %v2061_v49 = vpop.f32.mrf.mxu1 }
 0x41f   :  { %v2885_v5 = vadd.f32 %v2061_v49, %v259_v60 }
 0x420   :  { %v728_v61 = vpop.f32.mrf.mxu1 }
 0x421   :  { %v2883_v62 = vadd.f32 %v728_v61, %v254_v50 }
 0x423   :  { %2094 = vmatprep.mubr.f32.mxu0 %v2883_v62 }
 0x424   :  { %2095 = vmatmul.mubr.f32.vlgmr.msra.gmra.mxu0 %v2885_v5 }
 0x425   :  { %2133 = vmatpush3.msra.mxu0 %v2481_v0  ;;  %v1039_v0 = vld [vmem:[#allocation8 + $0x78] sm:$0xff] }
 0x426   :  { %2134 = vmatprep.subr.mxu0 %v2483_v1  ;;  %2167 = vmatprep.subr.mxu1 %v1039_v0 }
 0x427   :  { %2135 = vmatpush3.msra.mxu0 %v2483_v1 }
 0x428   :  { %2136 = vmatprep.subr.mxu0 %v2487_v2 }
 0x429   :  { %2137 = vmatpush3.msra.mxu0 %v2487_v2  ;;  %v264_v2 = vadd.f32 %v2696_v37, %v2748_v54  ;;  %v1025_v54 = vld [vmem:[#allocation8 + $0x8] sm:$0xff] }
 0x42a   :  { %2138 = vmatprep.subr.mxu0 %v2491_v3 }
 0x42b   :  { %2139 = vmatpush3.msra.mxu0 %v2491_v3  ;;  %v269_v3 = vadd.f32 %v2746_v53, %v2696_v37  ;;  %v1026_v53 = vld [vmem:[#allocation8 + $0x10] sm:$0xff] }
 0x42c   :  { %2140 = vmatprep.subr.mxu0 %v2501_v6 }
 0x42d   :  { %2141 = vmatpush3.msra.mxu0 %v2501_v6 }
 0x42e   :  { %2142 = vmatprep.subr.mxu0 %v2509_v9 }
 0x42f   :  { %2143 = vmatpush3.msra.mxu0 %v2509_v9 }
 0x430   :  { %2144 = vmatprep.subr.mxu0 %v2520_v11 }
 0x431   :  { %2145 = vmatpush3.msra.mxu0 %v2520_v11 }
 0x432   :  { %2146 = vmatprep.subr.mxu0 %v2529_v13 }
 0x433   :  { %2147 = vmatpush3.msra.mxu0 %v2529_v13  ;;  %v1038_v13 = vld [vmem:[#allocation8 + $0x70] sm:$0xff] }
 0x434   :  { %2148 = vmatprep.subr.mxu0 %v2537_v15 }
 0x435   :  { %2149 = vmatpush3.msra.mxu0 %v2537_v15  ;;  %v1037_v15 = vld [vmem:[#allocation8 + $0x68] sm:$0xff] }
 0x436   :  { %2150 = vmatprep.subr.mxu0 %v2544_v16 }
 0x437   :  { %2151 = vmatpush3.msra.mxu0 %v2544_v16  ;;  %v1036_v16 = vld [vmem:[#allocation8 + $0x60] sm:$0xff] }
 0x438   :  { %2152 = vmatprep.subr.mxu0 %v2553_v18 }
 0x439   :  { %2153 = vmatpush3.msra.mxu0 %v2553_v18  ;;  %v1035_v18 = vld [vmem:[#allocation8 + $0x58] sm:$0xff] }
 0x43a   :  { %2154 = vmatprep.subr.mxu0 %v2561_v20 }
 0x43b   :  { %2155 = vmatpush3.msra.mxu0 %v2561_v20  ;;  %v1034_v20 = vld [vmem:[#allocation8 + $0x50] sm:$0xff] }
 0x43c   :  { %2156 = vmatprep.subr.mxu0 %v2568_v21 }
 0x43d   :  { %2157 = vmatpush3.msra.mxu0 %v2568_v21  ;;  %v1033_v21 = vld [vmem:[#allocation8 + $0x48] sm:$0xff] }
 0x43e   :  { %2158 = vmatprep.subr.mxu0 %v2577_v23 }
 0x43f   :  { %2159 = vmatpush3.msra.mxu0 %v2577_v23  ;;  %v1032_v23 = vld [vmem:[#allocation8 + $0x40] sm:$0xff] }
 0x440   :  { %2160 = vmatprep.subr.mxu0 %v2585_v25 }
 0x441   :  { %2161 = vmatpush3.msra.mxu0 %v2585_v25  ;;  %v1031_v25 = vld [vmem:[#allocation8 + $0x38] sm:$0xff] }
 0x442   :  { %2162 = vmatprep.subr.mxu0 %v2592_v26 }
 0x443   :  { %2163 = vmatpush3.msra.mxu0 %v2592_v26  ;;  %v1029_v26 = vld [vmem:[#allocation8 + $0x28] sm:$0xff] }
 0x4e4   :  { %v2096_v1 = vpop.f32.mrf.mxu0 }
 0x4e5   :  { %v821_v11 = vadd.f32 %v2096_v1, %v269_v3 }
 0x4e6   :  { %v811_v6 = vpop.f32.mrf.mxu0 }
 0x4e7   :  { %v820_v9 = vadd.f32 %v811_v6, %v264_v2 }
 0x4e9   :  { %2129 = vmatprep.mubr.f32.mxu1 %v820_v9 }
 0x4ea   :  { %2130 = vmatmul.mubr.f32.vlgmr.msra.gmra.mxu1 %v821_v11 }
 0x4eb   :  { %2168 = vmatpush3.msra.mxu1 %v1039_v0  ;;  %2199 = vmatprep.mubr.f32.mxu1 %v2514_v10  ;;  %v1030_v10 = vld [vmem:[#allocation8 + $0x30] sm:$0xff] }
 0x4ec   :  { %2169 = vmatprep.subr.mxu1 %v1038_v13 }
 0x4ed   :  { %2170 = vmatpush3.msra.mxu1 %v1038_v13 }
 0x4ee   :  { %2171 = vmatprep.subr.mxu1 %v1037_v15 }
 0x4ef   :  { %2172 = vmatpush3.msra.mxu1 %v1037_v15 }
 0x4f0   :  { %2173 = vmatprep.subr.mxu1 %v1036_v16 }
 0x4f1   :  { %2174 = vmatpush3.msra.mxu1 %v1036_v16 }
 0x4f2   :  { %2175 = vmatprep.subr.mxu1 %v1035_v18 }
 0x4f3   :  { %2176 = vmatpush3.msra.mxu1 %v1035_v18 }
 0x4f4   :  { %2177 = vmatprep.subr.mxu1 %v1034_v20 }
 0x4f5   :  { %2178 = vmatpush3.msra.mxu1 %v1034_v20 }
 0x4f6   :  { %2179 = vmatprep.subr.mxu1 %v1033_v21 }
 0x4f7   :  { %2180 = vmatpush3.msra.mxu1 %v1033_v21 }
 0x4f8   :  { %2181 = vmatprep.subr.mxu1 %v1032_v23 }
 0x4f9   :  { %2182 = vmatpush3.msra.mxu1 %v1032_v23 }
 0x4fa   :  { %2183 = vmatprep.subr.mxu1 %v1031_v25 }
 0x4fb   :  { %2184 = vmatpush3.msra.mxu1 %v1031_v25 }
 0x4fc   :  { %2185 = vmatprep.subr.mxu1 %v1030_v10 }
 0x4fd   :  { %2186 = vmatpush3.msra.mxu1 %v1030_v10 }
 0x4fe   :  { %2187 = vmatprep.subr.mxu1 %v1029_v26 }
 0x4ff   :  { %2188 = vmatpush3.msra.mxu1 %v1029_v26 }
 0x500   :  { %2189 = vmatprep.subr.mxu1 %v1028_v51 }
 0x501   :  { %2190 = vmatpush3.msra.mxu1 %v1028_v51 }
 0x502   :  { %2191 = vmatprep.subr.mxu1 %v1027_v52 }
 0x503   :  { %2192 = vmatpush3.msra.mxu1 %v1027_v52 }
 0x504   :  { %2193 = vmatprep.subr.mxu1 %v1026_v53 }
 0x505   :  { %2194 = vmatpush3.msra.mxu1 %v1026_v53 }
 0x506   :  { %2195 = vmatprep.subr.mxu1 %v1025_v54 }
 0x507   :  { %2196 = vmatpush3.msra.mxu1 %v1025_v54 }
 0x508   :  { %2197 = vmatprep.subr.mxu1 %v1024_v36 }
 0x509   :  { %2198 = vmatpush3.msra.mxu1 %v1024_v36 }
 0x50a   :  { %2200 = vmatmul.mubr.f32.vlgmr.msra.gmra.mxu1 %v2604_v28  ;;  %v1023_v28 = vld [vmem:[%s3176_s3 + $0x8] sm:$0xff] }
 0x50b   :  { %2202 = vmatprep.mubr.f32.mxu1 %v2700_v43  ;;  %2223 = vmatprep.subr.mxu0 %v1023_v28 }
 0x50e   :  { %2203 = vmatmul.mubr.f32.gmra.mxu1 %v2702_v44  ;;  %v274_v44 = vadd.f32 %v2696_v37, %v2752_v56 }
 0x50f   :  { %2205 = vmatprep.mubr.f32.mxu1 %v2760_v63  ;;  %v279_v63 = vadd.f32 %v2750_v55, %v2696_v37 }
 0x512   :  { %2206 = vmatmul.mubr.f32.gmra.mxu1 %v2762_v4 }
 0x513   :  { %2208 = vmatprep.mubr.f32.mxu1 %v2800_v40  ;;  %v1022_v40 = vld [vmem:[%s3176_s3] sm:$0xff] }
 0x516   :  { %2209 = vmatmul.mubr.f32.gmra.mxu1 %v2802_v41 }
 0x517   :  { %2211 = vmatprep.mubr.f32.mxu1 %v2842_v48 }
 0x51a   :  { %2212 = vmatmul.mubr.f32.gmra.mxu1 %v2844_v59 }
 0x51b   :  { %2214 = vmatprep.mubr.f32.mxu1 %v2883_v62 }
 0x51e   :  { %2215 = vmatmul.mubr.f32.gmra.mxu1 %v2885_v5 }
 0x51f   :  { %2217 = vmatprep.mubr.f32.mxu1 %v820_v9 }
 0x522   :  { %2218 = vmatmul.mubr.f32.gmra.mxu1 %v821_v11 }
 0x5aa   :  { %v2131_v43 = vpop.f32.mrf.mxu1 }
 0x5ab   :  { %v904_v39 = vadd.f32 %v2131_v43, %v279_v63 }
 0x5ac   :  { %v894_v4 = vpop.f32.mrf.mxu1 }
 0x5ad   :  { %v903_v38 = vadd.f32 %v894_v4, %v274_v44 }
 0x5af   :  { %2164 = vmatprep.mubr.f32.mxu0 %v903_v38  ;;  %2220 = vmatprep.mubr.f32.mxu1 %v903_v38 }
 0x5b0   :  { %2165 = vmatmul.mubr.f32.vlgmr.msra.gmra.mxu0 %v904_v39  ;;  %2221 = vmatmul.mubr.f32.gmra.mxu1 %v904_v39 }
 0x5b1   :  { %2224 = vmatpush3.msra.mxu0 %v1023_v28  ;;  %2227 = vmatprep.mubr.msk.f32.mxu0 %vm98_vm0, %v2503_v7 }
 0x5b2   :  { %2225 = vmatprep.subr.mxu0 %v1022_v40 }
 0x5b3   :  { %2226 = vmatpush3.msra.mxu0 %v1022_v40 }
 0x5b4   :  { %2228 = vmatmul.mubr.msk.f32.vlgmr.msra.gmra.mxu0 %vm98_vm0, %v2506_v8 }
 0x5b5   :  { %2230 = vmatprep.mubr.msk.f32.mxu0 %vm98_vm0, %v2526_v12 }
 0x5b8   :  { %2231 = vmatmul.mubr.msk.f32.gmra.mxu0 %vm98_vm0, %v2534_v14 }
 0x5b9   :  { %2233 = vmatprep.mubr.msk.f32.mxu0 %vm98_vm0, %v2550_v17 }
 0x5bc   :  { %2234 = vmatmul.mubr.msk.f32.gmra.mxu0 %vm98_vm0, %v2558_v19 }
 0x5bd   :  { %2236 = vmatprep.mubr.msk.f32.mxu0 %vm98_vm0, %v2574_v22  ;;  %v289_v22 = vadd.f32 %v2754_v57, %v2696_v37 }
 0x5c0   :  { %2237 = vmatmul.mubr.msk.f32.gmra.mxu0 %vm98_vm0, %v2582_v24 }
 0x5c1   :  { %2239 = vmatprep.mubr.msk.f32.mxu0 %vm98_vm0, %v2598_v27 }
 0x5c4   :  { %2240 = vmatmul.mubr.msk.f32.gmra.mxu0 %vm98_vm0, %v2609_v29  ;;  %v284_v29 = vadd.f32 %v2696_v37, %v2756_v58 }
 0x5c5   :  { %2242 = vmatprep.mubr.msk.f32.mxu0 %vm98_vm0, %v2614_v30 }
 0x5c8   :  { %2243 = vmatmul.mubr.msk.f32.gmra.mxu0 %vm98_vm0, %v2624_v31 }
 0x5c9   :  { %2245 = vmatprep.mubr.msk.f32.mxu0 %vm98_vm0, %v2627_v32 }
 0x5ca   :  { %v2201_v7 = vpop.f32.mrf.mxu1 }
 0x5cc   :  { %2246 = vmatmul.mubr.msk.f32.gmra.mxu0 %vm98_vm0, %v2681_v33  ;;  %v1106_v8 = vpop.f32.mrf.mxu1 }
 0x5cd   :  { %2248 = vmatprep.mubr.msk.f32.mxu0 %vm98_vm0, %v2685_v34 }
 0x5ce   :  { %v2204_v12 = vpop.f32.mrf.mxu1 }
 0x5d0   :  { %2249 = vmatmul.mubr.msk.f32.gmra.mxu0 %vm98_vm0, %v2687_v35  ;;  %v1116_v14 = vpop.f32.mrf.mxu1  ;;  %v2985_v35 = vld [vmem:[%s3180_s7] ss:$0 sm:$0xff]  ;;  %s2412_s7 = smov [#allocation9]  }
 0x5d1   :  { %s1584_s16 = sshll.u32 %s2412_s7, 4  ;;  %s1585_s16 = int_to_ptr.vmem [resolvable:$true] %s1584_s16 }
 0x5d2   :  { %v2207_v17 = vpop.f32.mrf.mxu1  ;;  %s2381_s17 = scalar_lea.vmem %s1585_s16, 256  ;;  %p2386_p2 = scmp.lt.s32.totalorder %s1585_s16, %s1585_s16 }
 0x5d3   :  { %p2382_p1 = scmp.ne.s32.totalorder %s1585_s16, %s2381_s17  ;;  %p2387_p3 = scmp.lt.s32.totalorder %s2381_s17, %s2381_s17 }
 0x5d4   :  { %v1126_v19 = vpop.f32.mrf.mxu1 }
 0x5d5   :  { %p2388_p4 = por %p2387_p3, %p2386_p2 }
 0x5d6   :  { %v2210_v24 = vpop.f32.mrf.mxu1 }
 0x5d7   :  { %p2389_p5 = pnand %p2388_p4, %p2382_p1 }
 0x5d8   :  { %v1136_v33 = vpop.f32.mrf.mxu1 }
 0x5da   :  { %v2213_v42 = vpop.f32.mrf.mxu1 }
 0x5dc   :  { %v1146_v59 = vpop.f32.mrf.mxu1 }
 0x5de   :  { %v2216_v5 = vpop.f32.mrf.mxu1 }
 0x5e0   :  { %v1156_v11 = vpop.f32.mrf.mxu1 }
 0x5e2   :  { %v2219_v23 = vpop.f32.mrf.mxu1 }
 0x5e4   :  { %v1166_v54 = vpop.f32.mrf.mxu1 }
 0x670   :  { %v2166_v27 = vpop.f32.mrf.mxu0  ;;  %v2222_v43 = vpop.f32.mrf.mxu1 }
 0x671   :  { %v987_v30 = vadd.f32 %v2166_v27, %v289_v22 }
 0x672   :  { %v977_v31 = vpop.f32.mrf.mxu0 }
 0x673   :  { %989 = vst [vmem:[#allocation9 + $0x8] sm:$0xff] %v987_v30  ;;  %v986_v32 = vadd.f32 %v977_v31, %v284_v29 }
 0x674   :  { %v2229_v34 = vpop.f32.mrf.mxu0 }
 0x675   :  { %988 = vst [vmem:[#allocation9] sm:$0xff] %v986_v32  ;;  %v1305_v55 = vadd.f32 %v2229_v34, %v2201_v7  ;;  %v1176_v7 = vpop.f32.mrf.mxu1 }
 0x676   :  { %v1299_v56 = vpop.f32.mrf.mxu0 }
 0x677   :  { %v1300_v57 = vadd.f32 %v1299_v56, %v1106_v8  ;;  %v2988_v41 = vadd.f32 %v2985_v35, %v1305_v55 }
 0x678   :  { %v2232_v37 = vpop.f32.mrf.mxu0 }
 0x679   :  { %v1315_v58 = vadd.f32 %v2232_v37, %v2204_v12  ;;  %1403 = vmax.xlane.f32.xlu0 %v2988_v41  ;;  %v2992_v47 = vadd.f32 %v2985_v35, %v1300_v57 }
 0x67a   :  { %v1309_v45 = vpop.f32.mrf.mxu0 }
 0x67b   :  { %v1310_v46 = vadd.f32 %v1309_v45, %v1116_v14  ;;  %v2995_v48 = vadd.f32 %v2985_v35, %v1315_v58 }
 0x67c   :  { %v2235_v49 = vpop.f32.mrf.mxu0 }
 0x67d   :  { %1401 = vmax.xlane.f32.xlu0 %v2992_v47  ;;  %1407 = vmax.xlane.f32.xlu1 %v2995_v48  ;;  %v1325_v60 = vadd.f32 %v2235_v49, %v2207_v17  ;;  %v3000_v62 = vadd.f32 %v2985_v35, %v1310_v46 }
 0x67e   :  { %v1319_v50 = vpop.f32.mrf.mxu0 }
 0x67f   :  { %v1320_v61 = vadd.f32 %v1319_v50, %v1126_v19  ;;  %v3008_v9 = vadd.f32 %v2985_v35, %v1325_v60 }
 0x680   :  { %v2238_v0 = vpop.f32.mrf.mxu0 }
 0x681   :  { %1405 = vmax.xlane.f32.xlu1 %v3000_v62  ;;  %v3004_v1 = vadd.f32 %v2985_v35, %v1320_v61  ;;  %v1335_v3 = vadd.f32 %v2238_v0, %v2210_v24 }
 0x682   :  { %v1329_v2 = vpop.f32.mrf.mxu0 }
 0x683   :  { %v1330_v6 = vadd.f32 %v1329_v2, %v1136_v33  ;;  %1409 = vmax.xlane.f32.xlu0 %v3004_v1  ;;  %v1392_v21 = vadd.f32 %v2985_v35, %v1335_v3 }
 0x684   :  { %v2241_v13 = vpop.f32.mrf.mxu0 }
 0x685   :  { %1411 = vmax.xlane.f32.xlu1 %v3008_v9  ;;  %v1391_v15 = vadd.f32 %v2985_v35, %v1330_v6  ;;  %v1345_v18 = vadd.f32 %v2241_v13, %v2213_v42 }
 0x686   :  { %v1339_v16 = vpop.f32.mrf.mxu0 }
 0x687   :  { %v1340_v20 = vadd.f32 %v1339_v16, %v1146_v59  ;;  %1413 = vmax.xlane.f32.xlu0 %v1391_v15  ;;  %v3015_v53 = vadd.f32 %v2985_v35, %v1345_v18 }
 0x688   :  { %v2244_v25 = vpop.f32.mrf.mxu0 }
 0x689   :  { %1415 = vmax.xlane.f32.xlu1 %v1392_v21  ;;  %v1393_v10 = vadd.f32 %v2985_v35, %v1340_v20  ;;  %v1355_v51 = vadd.f32 %v2244_v25, %v2216_v5 }
 0x68a   :  { %v1349_v26 = vpop.f32.mrf.mxu0 }
 0x68b   :  { %v1350_v52 = vadd.f32 %v1349_v26, %v1156_v11  ;;  %1417 = vmax.xlane.f32.xlu0 %v1393_v10  ;;  %v3023_v38 = vadd.f32 %v2985_v35, %v1355_v51 }
 0x68c   :  { %v2247_v36 = vpop.f32.mrf.mxu0 }
 0x68d   :  { %1419 = vmax.xlane.f32.xlu1 %v3015_v53  ;;  %v3019_v28 = vadd.f32 %v2985_v35, %v1350_v52  ;;  %v1365_v63 = vadd.f32 %v2247_v36, %v2219_v23 }
 0x68e   :  { %v1359_v44 = vpop.f32.mrf.mxu0 }
 0x68f   :  { %v1360_v4 = vadd.f32 %v1359_v44, %v1166_v54  ;;  %1421 = vmax.xlane.f32.xlu0 %v3019_v28  ;;  %v3031_v17 = vadd.f32 %v2985_v35, %v1365_v63 }
 0x690   :  { %v2250_v39 = vpop.f32.mrf.mxu0 }
 0x691   :  { %1423 = vmax.xlane.f32.xlu1 %v3023_v38  ;;  %v3027_v40 = vadd.f32 %v2985_v35, %v1360_v4  ;;  %v1375_v12 = vadd.f32 %v2250_v39, %v2222_v43 }
 0x692   :  { %v1369_v8 = vpop.f32.mrf.mxu0 }
 0x693   :  { %v1370_v14 = vadd.f32 %v1369_v8, %v1176_v7  ;;  %1425 = vmax.xlane.f32.xlu0 %v3027_v40  ;;  %v3039_v22 = vadd.f32 %v2985_v35, %v1375_v12 }
 0x695   :  { %1427 = vmax.xlane.f32.xlu1 %v3031_v17  ;;  %v3035_v19 = vadd.f32 %v2985_v35, %v1370_v14 }
 0x697   :  { %1429 = vmax.xlane.f32.xlu0 %v3035_v19 }
 0x699   :  { %1431 = vmax.xlane.f32.xlu1 %v3039_v22 }
 0x702   :  { %v1404_v24 = vpop.xlane.xlu0 %1403 }
 0x703   :  { %v3043_v27 = vsub.f32 %v2988_v41, %v1404_v24 }
 0x705   :  { %v1451_v29 = vmul.f32 1.442695, %v3043_v27 }
 0x706   :  { %v1402_v30 = vpop.xlane.xlu0 %1401  ;;  %v1408_v31 = vpop.xlane.xlu1 %1407 }
 0x707   :  { %2257 = vpow2.f32 %v1451_v29  ;;  %v3047_v32 = vsub.f32 %v2992_v47, %v1402_v30  ;;  %v3050_v33 = vsub.f32 %v2995_v48, %v1408_v31 }
 0x709   :  { %v1449_v34 = vmul.f32 1.442695, %v3047_v32  ;;  %v1455_v35 = vmul.f32 1.442695, %v3050_v33 }
 0x70a   :  { %v1406_v55 = vpop.xlane.xlu1 %1405 }
 0x70b   :  { %2259 = vpow2.f32 %v1449_v34  ;;  %v3055_v56 = vsub.f32 %v3000_v62, %v1406_v55 }
 0x70c   :  { %2261 = vpow2.f32 %v1455_v35  ;;  %v1410_v57 = vpop.xlane.xlu0 %1409 }
 0x70d   :  { %v1453_v41 = vmul.f32 1.442695, %v3055_v56  ;;  %v3059_v42 = vsub.f32 %v3004_v1, %v1410_v57 }
 0x70e   :  { %v1412_v37 = vpop.xlane.xlu1 %1411 }
 0x70f   :  { %2263 = vpow2.f32 %v1453_v41  ;;  %v1457_v58 = vmul.f32 1.442695, %v3059_v42  ;;  %v3063_v45 = vsub.f32 %v3008_v9, %v1412_v37 }
 0x710   :  { %v1414_v46 = vpop.xlane.xlu0 %1413 }
 0x711   :  { %v1459_v47 = vmul.f32 1.442695, %v3063_v45  ;;  %v3066_v48 = vsub.f32 %v1391_v15, %v1414_v46  ;;  %2265 = vpow2.f32 %v1457_v58 }
 0x712   :  { %v1416_v59 = vpop.xlane.xlu1 %1415 }
 0x713   :  { %2267 = vpow2.f32 %v1459_v47  ;;  %v1461_v49 = vmul.f32 1.442695, %v3066_v48  ;;  %v3069_v50 = vsub.f32 %v1392_v21, %v1416_v59 }
 0x714   :  { %v2258_v60 = vpop.eup %2257  ;;  %v1418_v61 = vpop.xlane.xlu0 %1417 }
 0x715   :  { %v1463_v62 = vmul.f32 1.442695, %v3069_v50  ;;  %v3072_v5 = vsub.f32 %v1393_v10, %v1418_v61  ;;  %1483 = vadd.xlane.f32.xlu1 %v2258_v60  ;;  %2269 = vpow2.f32 %v1461_v49 }
 0x716   :  { %v1420_v0 = vpop.xlane.xlu1 %1419 }
 0x717   :  { %2271 = vpow2.f32 %v1463_v62  ;;  %v1465_v1 = vmul.f32 1.442695, %v3072_v5  ;;  %v3076_v2 = vsub.f32 %v3015_v53, %v1420_v0 }
 0x718   :  { %v2260_v3 = vpop.eup %2259  ;;  %v1422_v6 = vpop.xlane.xlu0 %1421 }
 0x719   :  { %v2262_v9 = vpop.eup %2261  ;;  %v1467_v11 = vmul.f32 1.442695, %v3076_v2  ;;  %v3080_v13 = vsub.f32 %v3019_v28, %v1422_v6  ;;  %1481 = vadd.xlane.f32.xlu0 %v2260_v3  ;;  %2273 = vpow2.f32 %v1465_v1 }
 0x71a   :  { %1487 = vadd.xlane.f32.xlu1 %v2262_v9  ;;  %v1424_v15 = vpop.xlane.xlu1 %1423 }
 0x71b   :  { %2275 = vpow2.f32 %v1467_v11  ;;  %v1469_v16 = vmul.f32 1.442695, %v3080_v13  ;;  %v3084_v18 = vsub.f32 %v3023_v38, %v1424_v15 }
 0x71c   :  { %v2264_v20 = vpop.eup %2263  ;;  %v1426_v21 = vpop.xlane.xlu0 %1425 }
 0x71d   :  { %v1471_v23 = vmul.f32 1.442695, %v3084_v18  ;;  %v3088_v25 = vsub.f32 %v3027_v40, %v1426_v21  ;;  %1485 = vadd.xlane.f32.xlu0 %v2264_v20  ;;  %2277 = vpow2.f32 %v1469_v16 }
 0x71e   :  { %v1428_v10 = vpop.xlane.xlu1 %1427  ;;  %v2266_v26 = vpop.eup %2265 }
 0x71f   :  { %2279 = vpow2.f32 %v1471_v23  ;;  %v1473_v51 = vmul.f32 1.442695, %v3088_v25  ;;  %v3092_v52 = vsub.f32 %v3031_v17, %v1428_v10 }
 0x720   :  { %v2268_v53 = vpop.eup %2267  ;;  %v1430_v54 = vpop.xlane.xlu0 %1429 }
 0x721   :  { %v1475_v36 = vmul.f32 1.442695, %v3092_v52  ;;  %v3096_v28 = vsub.f32 %v3035_v19, %v1430_v54  ;;  %1491 = vadd.xlane.f32.xlu1 %v2268_v53  ;;  %1489 = vadd.xlane.f32.xlu0 %v2266_v26  ;;  %2281 = vpow2.f32 %v1473_v51 }
 0x722   :  { %v1432_v43 = vpop.xlane.xlu1 %1431  ;;  %v2270_v44 = vpop.eup %2269 }
 0x723   :  { %2283 = vpow2.f32 %v1475_v36  ;;  %v1477_v63 = vmul.f32 1.442695, %v3096_v28  ;;  %v3100_v4 = vsub.f32 %v3039_v22, %v1432_v43 }
 0x724   :  { %v2272_v38 = vpop.eup %2271 }
 0x725   :  { %v1479_v39 = vmul.f32 1.442695, %v3100_v4  ;;  %1495 = vadd.xlane.f32.xlu1 %v2272_v38  ;;  %1493 = vadd.xlane.f32.xlu0 %v2270_v44  ;;  %2285 = vpow2.f32 %v1477_v63 }
 0x726   :  { %v2274_v40 = vpop.eup %2273 }
 0x727   :  { %2287 = vpow2.f32 %v1479_v39 }
 0x728   :  { %v2276_v7 = vpop.eup %2275 }
 0x729   :  { %1499 = vadd.xlane.f32.xlu1 %v2276_v7  ;;  %1497 = vadd.xlane.f32.xlu0 %v2274_v40 }
 0x72a   :  { %v2278_v8 = vpop.eup %2277 }
 0x72c   :  { %v2280_v12 = vpop.eup %2279 }
 0x72d   :  { %1503 = vadd.xlane.f32.xlu1 %v2280_v12  ;;  %1501 = vadd.xlane.f32.xlu0 %v2278_v8 }
 0x72e   :  { %v2282_v14 = vpop.eup %2281 }
 0x730   :  { %v2284_v17 = vpop.eup %2283 }
 0x731   :  { %1507 = vadd.xlane.f32.xlu1 %v2284_v17  ;;  %1505 = vadd.xlane.f32.xlu0 %v2282_v14 }
 0x732   :  { %v2286_v19 = vpop.eup %2285 }
 0x734   :  { %v2288_v22 = vpop.eup %2287 }
 0x735   :  { %1511 = vadd.xlane.f32.xlu1 %v2288_v22  ;;  %1509 = vadd.xlane.f32.xlu0 %v2286_v19 }
 0x736   :  { %2392 = shalt.err (!%p2389_p5)
}
 0x737   :  { %1590 = dma.vmem_to_hbm [thread:$0]  %s1585_s16, 256, %s3182_s9, [#allocation5], %s2409_s14, %s2409_s14, %s2410_s15  }
 0x79e   :  { %v1484_v24 = vpop.xlane.xlu1 %1483 }
 0x79f   :  { %2289 = vlog2.f32 %v1484_v24 }
 0x7a2   :  { %v1482_v29 = vpop.xlane.xlu0 %1481 }
 0x7a3   :  { %v1488_v30 = vpop.xlane.xlu1 %1487  ;;  %2291 = vlog2.f32 %v1482_v29 }
 0x7a4   :  { %2293 = vlog2.f32 %v1488_v30 }
 0x7a6   :  { %v1486_v31 = vpop.xlane.xlu0 %1485 }
 0x7a7   :  { %2295 = vlog2.f32 %v1486_v31 }
 0x7aa   :  { %v1492_v34 = vpop.xlane.xlu1 %1491  ;;  %v1490_v35 = vpop.xlane.xlu0 %1489 }
 0x7ab   :  { %2297 = vlog2.f32 %v1492_v34 }
 0x7ac   :  { %v2290_v55 = vpop.eup %2289  ;;  %2299 = vlog2.f32 %v1490_v35 }
 0x7ad   :  { %v1516_v57 = vmul.f32 0.6931472, %v2290_v55 }
 0x7ae   :  { %v1496_v41 = vpop.xlane.xlu1 %1495  ;;  %v1494_v37 = vpop.xlane.xlu0 %1493 }
 0x7af   :  { %v1546_v58 = vsub.f32 %v3043_v27, %v1516_v57  ;;  %2301 = vlog2.f32 %v1496_v41 }
 0x7b0   :  { %v2292_v46 = vpop.eup %2291  ;;  %2303 = vlog2.f32 %v1494_v37 }
 0x7b1   :  { %v2294_v47 = vpop.eup %2293  ;;  %1562 = vst [vmem:[%s3181_s8 + $0x8] sm:$0xff] %v1546_v58  ;;  %v1514_v59 = vmul.f32 0.6931472, %v2292_v46 }
 0x7b2   :  { %v1520_v49 = vmul.f32 0.6931472, %v2294_v47  ;;  %v1500_v60 = vpop.xlane.xlu1 %1499  ;;  %v1498_v61 = vpop.xlane.xlu0 %1497 }
 0x7b3   :  { %v1545_v62 = vsub.f32 %v3047_v32, %v1514_v59  ;;  %2305 = vlog2.f32 %v1500_v60 }
 0x7b4   :  { %v2296_v0 = vpop.eup %2295  ;;  %v1548_v1 = vsub.f32 %v3050_v33, %v1520_v49  ;;  %2307 = vlog2.f32 %v1498_v61 }
 0x7b5   :  { %1561 = vst [vmem:[%s3181_s8] sm:$0xff] %v1545_v62  ;;  %v1518_v27 = vmul.f32 0.6931472, %v2296_v0 }
 0x7b6   :  { %1564 = vst [vmem:[%s3181_s8 + $0x18] sm:$0xff] %v1548_v1  ;;  %v1504_v3 = vpop.xlane.xlu1 %1503  ;;  %v1502_v6 = vpop.xlane.xlu0 %1501 }
 0x7b7   :  { %v1547_v9 = vsub.f32 %v3055_v56, %v1518_v27  ;;  %2309 = vlog2.f32 %v1504_v3 }
 0x7b8   :  { %v2298_v32 = vpop.eup %2297  ;;  %2311 = vlog2.f32 %v1502_v6 }
 0x7b9   :  { %v2300_v11 = vpop.eup %2299  ;;  %1563 = vst [vmem:[%s3181_s8 + $0x10] sm:$0xff] %v1547_v9  ;;  %v1524_v33 = vmul.f32 0.6931472, %v2298_v32 }
 0x7ba   :  { %v1522_v15 = vmul.f32 0.6931472, %v2300_v11  ;;  %v1508_v16 = vpop.xlane.xlu1 %1507  ;;  %v1506_v20 = vpop.xlane.xlu0 %1505 }
 0x7bb   :  { %v1550_v21 = vsub.f32 %v3063_v45, %v1524_v33  ;;  %2313 = vlog2.f32 %v1508_v16 }
 0x7bc   :  { %v2302_v23 = vpop.eup %2301  ;;  %v1549_v10 = vsub.f32 %v3059_v42, %v1522_v15  ;;  %2315 = vlog2.f32 %v1506_v20 }
 0x7bd   :  { %v2304_v56 = vpop.eup %2303  ;;  %1566 = vst [vmem:[%s3181_s8 + $0x28] sm:$0xff] %v1550_v21  ;;  %v1528_v26 = vmul.f32 0.6931472, %v2302_v23 }
 0x7be   :  { %1565 = vst [vmem:[%s3181_s8 + $0x20] sm:$0xff] %v1549_v10  ;;  %v1526_v51 = vmul.f32 0.6931472, %v2304_v56  ;;  %v1512_v53 = vpop.xlane.xlu1 %1511  ;;  %v1510_v54 = vpop.xlane.xlu0 %1509 }
 0x7bf   :  { %v1552_v45 = vsub.f32 %v3069_v50, %v1528_v26  ;;  %2317 = vlog2.f32 %v1512_v53 }
 0x7c0   :  { %v2306_v36 = vpop.eup %2305  ;;  %v1551_v42 = vsub.f32 %v3066_v48, %v1526_v51  ;;  %2319 = vlog2.f32 %v1510_v54 }
 0x7c1   :  { %v2308_v43 = vpop.eup %2307  ;;  %1568 = vst [vmem:[%s3181_s8 + $0x38] sm:$0xff] %v1552_v45  ;;  %v1532_v44 = vmul.f32 0.6931472, %v2306_v36 }
 0x7c2   :  { %1567 = vst [vmem:[%s3181_s8 + $0x30] sm:$0xff] %v1551_v42  ;;  %v1530_v63 = vmul.f32 0.6931472, %v2308_v43 }
 0x7c3   :  { %v1554_v38 = vsub.f32 %v3076_v2, %v1532_v44 }
 0x7c4   :  { %v2310_v39 = vpop.eup %2309  ;;  %v1553_v50 = vsub.f32 %v3072_v5, %v1530_v63 }
 0x7c5   :  { %v2312_v40 = vpop.eup %2311  ;;  %1570 = vst [vmem:[%s3181_s8 + $0x48] sm:$0xff] %v1554_v38  ;;  %v1536_v48 = vmul.f32 0.6931472, %v2310_v39 }
 0x7c6   :  { %1569 = vst [vmem:[%s3181_s8 + $0x40] sm:$0xff] %v1553_v50  ;;  %v1534_v7 = vmul.f32 0.6931472, %v2312_v40 }
 0x7c7   :  { %v1556_v8 = vsub.f32 %v3084_v18, %v1536_v48 }
 0x7c8   :  { %v2314_v12 = vpop.eup %2313  ;;  %v1555_v14 = vsub.f32 %v3080_v13, %v1534_v7 }
 0x7c9   :  { %v2316_v2 = vpop.eup %2315  ;;  %1572 = vst [vmem:[%s3181_s8 + $0x58] sm:$0xff] %v1556_v8  ;;  %v1540_v5 = vmul.f32 0.6931472, %v2314_v12 }
 0x7ca   :  { %1571 = vst [vmem:[%s3181_s8 + $0x50] sm:$0xff] %v1555_v14  ;;  %v1538_v17 = vmul.f32 0.6931472, %v2316_v2 }
 0x7cb   :  { %v1558_v19 = vsub.f32 %v3092_v52, %v1540_v5 }
 0x7cc   :  { %v2318_v22 = vpop.eup %2317  ;;  %v1557_v24 = vsub.f32 %v3088_v25, %v1538_v17 }
 0x7cd   :  { %v2320_v18 = vpop.eup %2319  ;;  %1574 = vst [vmem:[%s3181_s8 + $0x68] sm:$0xff] %v1558_v19  ;;  %v1544_v13 = vmul.f32 0.6931472, %v2318_v22 }
 0x7ce   :  { %1573 = vst [vmem:[%s3181_s8 + $0x60] sm:$0xff] %v1557_v24  ;;  %v1542_v29 = vmul.f32 0.6931472, %v2320_v18 }
 0x7cf   :  { %v1560_v30 = vsub.f32 %v3100_v4, %v1544_v13 }
 0x7d0   :  { %v1559_v31 = vsub.f32 %v3096_v28, %v1542_v29 }
 0x7d1   :  { %1576 = vst [vmem:[%s3181_s8 + $0x78] sm:$0xff] %v1560_v30 }
 0x7d2   :  { %1575 = vst [vmem:[%s3181_s8 + $0x70] sm:$0xff] %v1559_v31 }
 0x7d3   :  { %2405 = dma.done.wait [#allocation5], 256  }
 0x7d4   :  { %2406 = vsyncadd [#allocation5], 4294967040 }
 0x7d5   :  { %1596 = vsyncpa [#allocation4], 1 }
 0x7d6   :  { %1597 = vsyncpa [#allocation7], 1 }
 0x7d7   :  { %1598 = vsyncpa [#allocation5], 1 }

</bundles_post_ra>
